<compile_context>
chip_gen: v6e
topology: v6e:2x2x1
jax: 0.10.0
libtpu: 0.0.40
codegen_flags: <defaults>
</compile_context>

<pallas_src>
import functools

import jax
import jax.numpy as jnp
from jax import lax
from jax.experimental import pallas as pl
from jax.experimental.pallas import tpu as pltpu

EPS = 1e-5


def _round_up(x, m):
    return ((x + m - 1) // m) * m


# ----------------------------------------------------------------------------
# Pass 1: fused im2col + conv matmul + per-tile BN partial statistics.
#
# Grid = (N, Do, kd).  Per step:
#   x block   : one shifted input depth plane [Hp, Wp, C]       (bf16, DMA'd)
#   w block   : full dense weight [k, k, k, C, cout_p]          (bf16, resident)
#   y block   : conv output rows for this (n, do) [Ho*Wo, cout_p] (f32, acc)
#   stats blk : [8, cout_p]  row 0 = sum(y), row 1 = sum((y - tile_mean)^2)
# ----------------------------------------------------------------------------
def fused_conv_kernel(x_ref, w_ref, y_ref, stats_ref, *, k, ho, wo, stride):
    kd = pl.program_id(2)
    n_rows = ho * wo
    cp = y_ref.shape[-1]

    @pl.when(kd == 0)
    def _():
        y_ref[...] = jnp.zeros_like(y_ref)

    x = x_ref[...]                                   # [Hp, Wp, C] bf16
    wk = w_ref[kd]                                   # [k, k, C, cout_p] bf16
    acc = jnp.zeros((n_rows, cp), jnp.float32)
    for kh in range(k):
        for kw in range(k):
            if stride == 1:
                patch = x[kh:kh + ho, kw:kw + wo, :]
            else:
                # TODO(synk): validate Mosaic lowering of strided value slices
                # for stride > 1 (the demo exercises stride == 1 only).
                patch = x[kh:kh + stride * (ho - 1) + 1:stride,
                          kw:kw + stride * (wo - 1) + 1:stride, :]
            acc = acc + jnp.dot(patch.reshape(n_rows, patch.shape[-1]),
                                wk[kh, kw],
                                preferred_element_type=jnp.float32)
    y_ref[...] += acc

    @pl.when(kd == pl.num_programs(2) - 1)
    def _():
        # Per-tile BN partials from the f32 accumulator already in VMEM.
        y = y_ref[...]
        tsum = jnp.sum(y, axis=0, keepdims=True)                 # [1, cp]
        tmean = tsum * (1.0 / n_rows)
        d = y - tmean
        tm2 = jnp.sum(d * d, axis=0, keepdims=True)              # [1, cp]
        stats_ref[...] = jnp.concatenate(
            [tsum, tm2, jnp.zeros((6, cp), jnp.float32)], axis=0)


def fused_conv_pallas(xp, w_dense, *, n, do, ho, wo, k, stride):
    _, dp, hp, wp, c = xp.shape
    cp = w_dense.shape[-1]
    kernel = functools.partial(fused_conv_kernel, k=k, ho=ho, wo=wo,
                               stride=stride)
    grid_spec = pltpu.PrefetchScalarGridSpec(
        num_scalar_prefetch=0,
        grid=(n, do, k),                             # reduction (kd) axis last
        in_specs=[
            # One shifted input depth plane per (n, do, kd).
            pl.BlockSpec((None, None, hp, wp, c),
                         lambda i, j, kd: (i, j * stride + kd, 0, 0, 0)),
            # Whole dense weight, constant index map -> VMEM-resident.
            pl.BlockSpec((k, k, k, c, cp),
                         lambda i, j, kd: (0, 0, 0, 0, 0)),
        ],
        out_specs=[
            pl.BlockSpec((None, None, ho * wo, cp),
                         lambda i, j, kd: (i, j, 0, 0)),
            pl.BlockSpec((None, None, 8, cp),
                         lambda i, j, kd: (i, j, 0, 0)),
        ],
    )
    return pl.pallas_call(
        kernel,
        out_shape=(
            jax.ShapeDtypeStruct((n, do, ho * wo, cp), jnp.float32),
            jax.ShapeDtypeStruct((n, do, 8, cp), jnp.float32),
        ),
        grid_spec=grid_spec,
        compiler_params=pltpu.CompilerParams(
            dimension_semantics=("parallel", "parallel", "arbitrary"),
            vmem_limit_bytes=32 * 1024 * 1024,
        ),
    )(xp, w_dense)


# ----------------------------------------------------------------------------
# Pass 2: BN affine (precomputed scale/shift) + ReLU, M-parallel, in place.
# ----------------------------------------------------------------------------
def bn_relu_kernel(y_ref, scale_ref, shift_ref, o_ref):
    o_ref[...] = jnp.maximum(
        y_ref[...] * scale_ref[...] + shift_ref[...], 0.0
    ).astype(o_ref.dtype)


def bn_relu_pallas(y, scale, shift):
    n, do, rows, cp = y.shape
    grid_spec = pltpu.PrefetchScalarGridSpec(
        num_scalar_prefetch=0,
        grid=(n, do),
        in_specs=[
            pl.BlockSpec((None, None, rows, cp), lambda i, j: (i, j, 0, 0)),
            pl.BlockSpec((1, cp), lambda i, j: (0, 0)),
            pl.BlockSpec((1, cp), lambda i, j: (0, 0)),
        ],
        out_specs=pl.BlockSpec((None, None, rows, cp),
                               lambda i, j: (i, j, 0, 0)),
    )
    return pl.pallas_call(
        bn_relu_kernel,
        out_shape=jax.ShapeDtypeStruct(y.shape, jnp.float32),
        grid_spec=grid_spec,
        input_output_aliases={0: 0},                 # write in place on y
        compiler_params=pltpu.CompilerParams(
            dimension_semantics=("parallel", "parallel"),
            vmem_limit_bytes=32 * 1024 * 1024,
        ),
    )(y, scale, shift)


# ----------------------------------------------------------------------------
# Wrapper: layout prep, dense block-diagonal weight, BN finalize, final layout.
# ----------------------------------------------------------------------------
def conv_module_forward(x, w_grouped, gamma, beta, *, stride, padding, groups):
    n, cin, d, h, w = x.shape
    cout, cig, k, _, _ = w_grouped.shape
    assert cin % groups == 0 and cout % groups == 0, "channels must divide groups"
    assert cig == cin // groups, "weight shape inconsistent with groups"

    do = (d + 2 * padding - k) // stride + 1
    ho = (h + 2 * padding - k) // stride + 1
    wo = (w + 2 * padding - k) // stride + 1
    m = n * do * ho * wo

    # NCDHW -> spatially padded NDHWC, bf16 (MXU operand dtype).
    xp = jnp.transpose(x, (0, 2, 3, 4, 1)).astype(jnp.bfloat16)
    xp = jnp.pad(xp, ((0, 0), (padding, padding), (padding, padding),
                      (padding, padding), (0, 0)))

    # Dense block-diagonal weight, built directly in (k,k,k,Cin,Cout) layout.
    # TODO(synk): exploit the grouped structure instead of a dense matmul with
    # (groups-1)/groups structural zeros; per-group K is only (Cin/groups)*k^3,
    # so it needs a group-blocked Cout tiling to still fill the MXU.
    cout_p = _round_up(cout, 128)
    cog = cout // groups
    wg = w_grouped.reshape(groups, cog, cig, k, k, k)
    eye = jnp.eye(groups, dtype=w_grouped.dtype)
    w_dense = jnp.einsum("gcidhw,fg->dhwfigc", wg, eye)
    w_dense = w_dense.reshape(k, k, k, cin, cout)
    w_dense = jnp.pad(w_dense, ((0, 0),) * 4 + ((0, cout_p - cout),))
    w_dense = w_dense.astype(jnp.bfloat16)

    y, stats = fused_conv_pallas(xp, w_dense, n=n, do=do, ho=ho, wo=wo,
                                 k=k, stride=stride)

    # Exact cross-tile BatchNorm batch stats (parallel combine of equal-sized
    # tiles; avoids E[x^2]-E[x]^2 cancellation).  Padded Cout lanes are zero
    # everywhere and get scale = shift = 0.
    rows = ho * wo
    tsum = stats[:, :, 0, :]                                     # [n, do, cp]
    tm2 = stats[:, :, 1, :]
    mean = jnp.sum(tsum, axis=(0, 1)) / m
    tmean = tsum / rows
    m2 = jnp.sum(tm2, axis=(0, 1)) + rows * jnp.sum((tmean - mean) ** 2,
                                                    axis=(0, 1))
    var = jnp.maximum(m2 / m, 0.0)
    inv = lax.rsqrt(var + EPS)
    gamma_p = jnp.pad(gamma.astype(jnp.float32), (0, cout_p - cout))
    beta_p = jnp.pad(beta.astype(jnp.float32), (0, cout_p - cout))
    scale = (gamma_p * inv).reshape(1, cout_p)
    shift = (beta_p - mean * gamma_p * inv).reshape(1, cout_p)

    out = bn_relu_pallas(y, scale, shift)                        # [n,do,rows,cp]

    # NCDHW to match the PyTorch module.  TODO(synk): a channels-last consumer
    # could take out[..., :cout] reshaped to (n, do, ho, wo, cout) directly and
    # skip this extra HBM transpose pass.
    out = out.reshape(n, do, ho, wo, cout_p)[..., :cout]
    return jnp.transpose(out, (0, 4, 1, 2, 3))


# ----------------------------------------------------------------------------
# Pure-JAX reference (bf16-rounded conv operands to match the kernel's MXU
# precision; accumulation and BN math in f32, like the kernel).
# ----------------------------------------------------------------------------
def reference_forward(x, w_grouped, gamma, beta, *, stride, padding, groups):
    xc = x.astype(jnp.bfloat16).astype(jnp.float32)
    wc = w_grouped.astype(jnp.bfloat16).astype(jnp.float32)
    y = lax.conv_general_dilated(
        xc, wc,
        window_strides=(stride,) * 3,
        padding=[(padding, padding)] * 3,
        dimension_numbers=("NCDHW", "OIDHW", "NCDHW"),
        feature_group_count=groups,
        preferred_element_type=jnp.float32,
    )
    mean = y.mean(axis=(0, 2, 3, 4), keepdims=True)
    var = ((y - mean) ** 2).mean(axis=(0, 2, 3, 4), keepdims=True)
    y_hat = (y - mean) * lax.rsqrt(var + EPS)
    out = y_hat * gamma.reshape(1, -1, 1, 1, 1) + beta.reshape(1, -1, 1, 1, 1)
    return jnp.maximum(out, 0.0)


if __name__ == "__main__":
    # Small shapes consistent with the module (groups=32 default => C >= 32).
    N, Cin, Cout = 2, 64, 64
    D, H, W = 4, 8, 8
    ksize, stride, padding, groups = 3, 1, 1, 32

    key = jax.random.PRNGKey(0)
    kx, kw, kg, kb = jax.random.split(key, 4)
    x = jax.random.normal(kx, (N, Cin, D, H, W), dtype=jnp.float32)
    w_grouped = 0.1 * jax.random.normal(
        kw, (Cout, Cin // groups, ksize, ksize, ksize), dtype=jnp.float32
    )
    gamma = 1.0 + 0.1 * jax.random.normal(kg, (Cout,), dtype=jnp.float32)
    beta = 0.1 * jax.random.normal(kb, (Cout,), dtype=jnp.float32)

    fwd = functools.partial(
        conv_module_forward, stride=stride, padding=padding, groups=groups
    )
    out = jax.jit(fwd)(x, w_grouped, gamma, beta)
    out = jax.block_until_ready(out)

    ref = reference_forward(
        x, w_grouped, gamma, beta, stride=stride, padding=padding, groups=groups
    )
    assert out.shape == (N, Cout, D, H, W)
    max_err = float(jnp.max(jnp.abs(out - ref)))
    assert jnp.allclose(out, ref, rtol=2e-3, atol=2e-3), max_err
    print("KERNEL_OK")
</pallas_src>

<mosaic_0001>
module attributes {stable_mosaic.version = 11 : i64} {
  func.func @fused_conv_kernel(%arg0: i32, %arg1: i32, %arg2: i32, %arg3: memref<1x1x10x10x64xbf16, #tpu.memory_space<vmem>>, %arg4: memref<3x3x3x64x128xbf16, #tpu.memory_space<vmem>>, %arg5: memref<1x1x64x128xf32, #tpu.memory_space<vmem>>, %arg6: memref<1x1x8x128xf32, #tpu.memory_space<vmem>>) attributes {dimension_semantics = [#tpu.dimension_semantics<parallel>, #tpu.dimension_semantics<parallel>, #tpu.dimension_semantics<arbitrary>], iteration_bounds = array<i64: 2, 4, 3>, scalar_prefetch = 0 : i64, scratch_operands = 0 : i64, tpu.core_type = #tpu.core_type<tc>, window_params = [{transform_indices = @transform_0, window_bounds = array<i64: 1, 1, 10, 10, 64>}, {pipeline_mode = #tpu.pipeline_mode<synchronous>, transform_indices = @transform_1, window_bounds = array<i64: 3, 3, 3, 64, 128>}, {transform_indices = @transform_2, window_bounds = array<i64: 1, 1, 64, 128>}, {transform_indices = @transform_3, window_bounds = array<i64: 1, 1, 8, 128>}]} {
    %c0_i32 = arith.constant 0 : i32
    %0 = arith.cmpi eq, %arg2, %c0_i32 : i32
    %1 = arith.extui %0 : i1 to i32
    %c0_i32_0 = arith.constant 0 : i32
    %2 = arith.cmpi ne, %1, %c0_i32_0 : i32
    scf.if %2 {
      %cst_27 = arith.constant 0.000000e+00 : f32
      %72 = vector.broadcast %cst_27 : f32 to vector<64x128xf32>
      %c0_28 = arith.constant 0 : index
      %c0_29 = arith.constant 0 : index
      %c0_30 = arith.constant 0 : index
      %c0_31 = arith.constant 0 : index
      %73 = vector.load %arg5[%c0_28, %c0_29, %c0_30, %c0_31] : memref<1x1x64x128xf32, #tpu.memory_space<vmem>>, vector<1x1x64x128xf32>
      %74 = vector.shape_cast %73 : vector<1x1x64x128xf32> to vector<64x128xf32>
      %75 = vector.shape_cast %72 : vector<64x128xf32> to vector<1x1x64x128xf32>
      tpu.vector_store %arg5[%c0_28, %c0_29, %c0_30, %c0_31], %75 {strides = array<i32>} : memref<1x1x64x128xf32, #tpu.memory_space<vmem>>, vector<1x1x64x128xf32>,
    } else {
    }
    %c0 = arith.constant 0 : index
    %c0_1 = arith.constant 0 : index
    %c0_2 = arith.constant 0 : index
    %c0_3 = arith.constant 0 : index
    %c0_4 = arith.constant 0 : index
    %3 = vector.load %arg3[%c0, %c0_1, %c0_2, %c0_3, %c0_4] : memref<1x1x10x10x64xbf16, #tpu.memory_space<vmem>>, vector<1x1x10x10x64xbf16>
    %4 = vector.shape_cast %3 : vector<1x1x10x10x64xbf16> to vector<10x10x64xbf16>
    %5 = arith.index_cast %arg2 : i32 to index
    %c0_5 = arith.constant 0 : index
    %c0_6 = arith.constant 0 : index
    %c0_7 = arith.constant 0 : index
    %c0_8 = arith.constant 0 : index
    %6 = vector.load %arg4[%5, %c0_5, %c0_6, %c0_7, %c0_8] : memref<3x3x3x64x128xbf16, #tpu.memory_space<vmem>>, vector<1x3x3x64x128xbf16>
    %7 = vector.shape_cast %6 : vector<1x3x3x64x128xbf16> to vector<3x3x64x128xbf16>
    %cst = arith.constant 0.000000e+00 : f32
    %8 = vector.broadcast %cst : f32 to vector<64x128xf32>
    %9 = vector.extract_strided_slice %4 {offsets = [0, 0, 0], sizes = [8, 8, 64], strides = [1, 1, 1]} : vector<10x10x64xbf16> to vector<8x8x64xbf16>
    %10 = vector.shape_cast %9 : vector<8x8x64xbf16> to vector<64x64xbf16>
    %11 = vector.extract_strided_slice %7 {offsets = [0, 0, 0, 0], sizes = [1, 1, 64, 128], strides = [1, 1, 1, 1]} : vector<3x3x64x128xbf16> to vector<1x1x64x128xbf16>
    %12 = vector.shape_cast %11 : vector<1x1x64x128xbf16> to vector<64x128xbf16>
    %cst_9 = arith.constant dense<0.000000e+00> : vector<64x128xf32>
    %13 = tpu.matmul %10, %12, %cst_9 {dimension_numbers = #tpu.dot_dimension_numbers<[1], [0], [0], [1], [0, 0, 1, 1], [], []>} : vector<64x64xbf16>, vector<64x128xbf16>, vector<64x128xf32> -> vector<64x128xf32>
    %14 = arith.addf %8, %13 : vector<64x128xf32>
    %15 = vector.extract_strided_slice %4 {offsets = [0, 1, 0], sizes = [8, 8, 64], strides = [1, 1, 1]} : vector<10x10x64xbf16> to vector<8x8x64xbf16>
    %16 = vector.shape_cast %15 : vector<8x8x64xbf16> to vector<64x64xbf16>
    %17 = vector.extract_strided_slice %7 {offsets = [0, 1, 0, 0], sizes = [1, 1, 64, 128], strides = [1, 1, 1, 1]} : vector<3x3x64x128xbf16> to vector<1x1x64x128xbf16>
    %18 = vector.shape_cast %17 : vector<1x1x64x128xbf16> to vector<64x128xbf16>
    %cst_10 = arith.constant dense<0.000000e+00> : vector<64x128xf32>
    %19 = tpu.matmul %16, %18, %cst_10 {dimension_numbers = #tpu.dot_dimension_numbers<[1], [0], [0], [1], [0, 0, 1, 1], [], []>} : vector<64x64xbf16>, vector<64x128xbf16>, vector<64x128xf32> -> vector<64x128xf32>
    %20 = arith.addf %14, %19 : vector<64x128xf32>
    %21 = vector.extract_strided_slice %4 {offsets = [0, 2, 0], sizes = [8, 8, 64], strides = [1, 1, 1]} : vector<10x10x64xbf16> to vector<8x8x64xbf16>
    %22 = vector.shape_cast %21 : vector<8x8x64xbf16> to vector<64x64xbf16>
    %23 = vector.extract_strided_slice %7 {offsets = [0, 2, 0, 0], sizes = [1, 1, 64, 128], strides = [1, 1, 1, 1]} : vector<3x3x64x128xbf16> to vector<1x1x64x128xbf16>
    %24 = vector.shape_cast %23 : vector<1x1x64x128xbf16> to vector<64x128xbf16>
    %cst_11 = arith.constant dense<0.000000e+00> : vector<64x128xf32>
    %25 = tpu.matmul %22, %24, %cst_11 {dimension_numbers = #tpu.dot_dimension_numbers<[1], [0], [0], [1], [0, 0, 1, 1], [], []>} : vector<64x64xbf16>, vector<64x128xbf16>, vector<64x128xf32> -> vector<64x128xf32>
    %26 = arith.addf %20, %25 : vector<64x128xf32>
    %27 = vector.extract_strided_slice %4 {offsets = [1, 0, 0], sizes = [8, 8, 64], strides = [1, 1, 1]} : vector<10x10x64xbf16> to vector<8x8x64xbf16>
    %28 = vector.shape_cast %27 : vector<8x8x64xbf16> to vector<64x64xbf16>
    %29 = vector.extract_strided_slice %7 {offsets = [1, 0, 0, 0], sizes = [1, 1, 64, 128], strides = [1, 1, 1, 1]} : vector<3x3x64x128xbf16> to vector<1x1x64x128xbf16>
    %30 = vector.shape_cast %29 : vector<1x1x64x128xbf16> to vector<64x128xbf16>
    %cst_12 = arith.constant dense<0.000000e+00> : vector<64x128xf32>
    %31 = tpu.matmul %28, %30, %cst_12 {dimension_numbers = #tpu.dot_dimension_numbers<[1], [0], [0], [1], [0, 0, 1, 1], [], []>} : vector<64x64xbf16>, vector<64x128xbf16>, vector<64x128xf32> -> vector<64x128xf32>
    %32 = arith.addf %26, %31 : vector<64x128xf32>
    %33 = vector.extract_strided_slice %4 {offsets = [1, 1, 0], sizes = [8, 8, 64], strides = [1, 1, 1]} : vector<10x10x64xbf16> to vector<8x8x64xbf16>
    %34 = vector.shape_cast %33 : vector<8x8x64xbf16> to vector<64x64xbf16>
    %35 = vector.extract_strided_slice %7 {offsets = [1, 1, 0, 0], sizes = [1, 1, 64, 128], strides = [1, 1, 1, 1]} : vector<3x3x64x128xbf16> to vector<1x1x64x128xbf16>
    %36 = vector.shape_cast %35 : vector<1x1x64x128xbf16> to vector<64x128xbf16>
    %cst_13 = arith.constant dense<0.000000e+00> : vector<64x128xf32>
    %37 = tpu.matmul %34, %36, %cst_13 {dimension_numbers = #tpu.dot_dimension_numbers<[1], [0], [0], [1], [0, 0, 1, 1], [], []>} : vector<64x64xbf16>, vector<64x128xbf16>, vector<64x128xf32> -> vector<64x128xf32>
    %38 = arith.addf %32, %37 : vector<64x128xf32>
    %39 = vector.extract_strided_slice %4 {offsets = [1, 2, 0], sizes = [8, 8, 64], strides = [1, 1, 1]} : vector<10x10x64xbf16> to vector<8x8x64xbf16>
    %40 = vector.shape_cast %39 : vector<8x8x64xbf16> to vector<64x64xbf16>
    %41 = vector.extract_strided_slice %7 {offsets = [1, 2, 0, 0], sizes = [1, 1, 64, 128], strides = [1, 1, 1, 1]} : vector<3x3x64x128xbf16> to vector<1x1x64x128xbf16>
    %42 = vector.shape_cast %41 : vector<1x1x64x128xbf16> to vector<64x128xbf16>
    %cst_14 = arith.constant dense<0.000000e+00> : vector<64x128xf32>
    %43 = tpu.matmul %40, %42, %cst_14 {dimension_numbers = #tpu.dot_dimension_numbers<[1], [0], [0], [1], [0, 0, 1, 1], [], []>} : vector<64x64xbf16>, vector<64x128xbf16>, vector<64x128xf32> -> vector<64x128xf32>
    %44 = arith.addf %38, %43 : vector<64x128xf32>
    %45 = vector.extract_strided_slice %4 {offsets = [2, 0, 0], sizes = [8, 8, 64], strides = [1, 1, 1]} : vector<10x10x64xbf16> to vector<8x8x64xbf16>
    %46 = vector.shape_cast %45 : vector<8x8x64xbf16> to vector<64x64xbf16>
    %47 = vector.extract_strided_slice %7 {offsets = [2, 0, 0, 0], sizes = [1, 1, 64, 128], strides = [1, 1, 1, 1]} : vector<3x3x64x128xbf16> to vector<1x1x64x128xbf16>
    %48 = vector.shape_cast %47 : vector<1x1x64x128xbf16> to vector<64x128xbf16>
    %cst_15 = arith.constant dense<0.000000e+00> : vector<64x128xf32>
    %49 = tpu.matmul %46, %48, %cst_15 {dimension_numbers = #tpu.dot_dimension_numbers<[1], [0], [0], [1], [0, 0, 1, 1], [], []>} : vector<64x64xbf16>, vector<64x128xbf16>, vector<64x128xf32> -> vector<64x128xf32>
    %50 = arith.addf %44, %49 : vector<64x128xf32>
    %51 = vector.extract_strided_slice %4 {offsets = [2, 1, 0], sizes = [8, 8, 64], strides = [1, 1, 1]} : vector<10x10x64xbf16> to vector<8x8x64xbf16>
    %52 = vector.shape_cast %51 : vector<8x8x64xbf16> to vector<64x64xbf16>
    %53 = vector.extract_strided_slice %7 {offsets = [2, 1, 0, 0], sizes = [1, 1, 64, 128], strides = [1, 1, 1, 1]} : vector<3x3x64x128xbf16> to vector<1x1x64x128xbf16>
    %54 = vector.shape_cast %53 : vector<1x1x64x128xbf16> to vector<64x128xbf16>
    %cst_16 = arith.constant dense<0.000000e+00> : vector<64x128xf32>
    %55 = tpu.matmul %52, %54, %cst_16 {dimension_numbers = #tpu.dot_dimension_numbers<[1], [0], [0], [1], [0, 0, 1, 1], [], []>} : vector<64x64xbf16>, vector<64x128xbf16>, vector<64x128xf32> -> vector<64x128xf32>
    %56 = arith.addf %50, %55 : vector<64x128xf32>
    %57 = vector.extract_strided_slice %4 {offsets = [2, 2, 0], sizes = [8, 8, 64], strides = [1, 1, 1]} : vector<10x10x64xbf16> to vector<8x8x64xbf16>
    %58 = vector.shape_cast %57 : vector<8x8x64xbf16> to vector<64x64xbf16>
    %59 = vector.extract_strided_slice %7 {offsets = [2, 2, 0, 0], sizes = [1, 1, 64, 128], strides = [1, 1, 1, 1]} : vector<3x3x64x128xbf16> to vector<1x1x64x128xbf16>
    %60 = vector.shape_cast %59 : vector<1x1x64x128xbf16> to vector<64x128xbf16>
    %cst_17 = arith.constant dense<0.000000e+00> : vector<64x128xf32>
    %61 = tpu.matmul %58, %60, %cst_17 {dimension_numbers = #tpu.dot_dimension_numbers<[1], [0], [0], [1], [0, 0, 1, 1], [], []>} : vector<64x64xbf16>, vector<64x128xbf16>, vector<64x128xf32> -> vector<64x128xf32>
    %62 = arith.addf %56, %61 : vector<64x128xf32>
    %c0_18 = arith.constant 0 : index
    %c0_19 = arith.constant 0 : index
    %c0_20 = arith.constant 0 : index
    %c0_21 = arith.constant 0 : index
    %63 = vector.load %arg5[%c0_18, %c0_19, %c0_20, %c0_21] : memref<1x1x64x128xf32, #tpu.memory_space<vmem>>, vector<1x1x64x128xf32>
    %64 = vector.shape_cast %63 : vector<1x1x64x128xf32> to vector<64x128xf32>
    %65 = arith.addf %64, %62 : vector<64x128xf32>
    %c0_22 = arith.constant 0 : index
    %c0_23 = arith.constant 0 : index
    %c0_24 = arith.constant 0 : index
    %c0_25 = arith.constant 0 : index
    %66 = vector.load %arg5[%c0_22, %c0_23, %c0_24, %c0_25] : memref<1x1x64x128xf32, #tpu.memory_space<vmem>>, vector<1x1x64x128xf32>
    %67 = vector.shape_cast %66 : vector<1x1x64x128xf32> to vector<64x128xf32>
    %68 = vector.shape_cast %65 : vector<64x128xf32> to vector<1x1x64x128xf32>
    tpu.vector_store %arg5[%c0_22, %c0_23, %c0_24, %c0_25], %68 {strides = array<i32>} : memref<1x1x64x128xf32, #tpu.memory_space<vmem>>, vector<1x1x64x128xf32>,
    %c2_i32 = arith.constant 2 : i32
    %69 = arith.cmpi eq, %arg2, %c2_i32 : i32
    %70 = arith.extui %69 : i1 to i32
    %c0_i32_26 = arith.constant 0 : i32
    %71 = arith.cmpi ne, %70, %c0_i32_26 : i32
    scf.if %71 {
      %c0_27 = arith.constant 0 : index
      %c0_28 = arith.constant 0 : index
      %c0_29 = arith.constant 0 : index
      %c0_30 = arith.constant 0 : index
      %72 = vector.load %arg5[%c0_27, %c0_28, %c0_29, %c0_30] : memref<1x1x64x128xf32, #tpu.memory_space<vmem>>, vector<1x1x64x128xf32>
      %73 = vector.shape_cast %72 : vector<1x1x64x128xf32> to vector<64x128xf32>
      %cst_31 = arith.constant dense<0.000000e+00> : vector<128xf32>
      %74 = vector.multi_reduction <add>, %73, %cst_31 [0] : vector<64x128xf32> to vector<128xf32>
      %75 = vector.shape_cast %74 : vector<128xf32> to vector<1x128xf32>
      %cst_32 = arith.constant 1.562500e-02 : f32
      %76 = vector.broadcast %cst_32 : f32 to vector<1x128xf32>
      %77 = arith.mulf %75, %76 : vector<1x128xf32>
      %78 = vector.broadcast %77 : vector<1x128xf32> to vector<64x128xf32>
      %79 = arith.subf %73, %78 : vector<64x128xf32>
      %80 = arith.mulf %79, %79 : vector<64x128xf32>
      %cst_33 = arith.constant dense<0.000000e+00> : vector<128xf32>
      %81 = vector.multi_reduction <add>, %80, %cst_33 [0] : vector<64x128xf32> to vector<128xf32>
      %82 = vector.shape_cast %81 : vector<128xf32> to vector<1x128xf32>
      %cst_34 = arith.constant 0.000000e+00 : f32
      %83 = vector.broadcast %cst_34 : f32 to vector<6x128xf32>
      %84 = tpu.concatenate %75, %82, %83 in 0 : vector<1x128xf32>, vector<1x128xf32>, vector<6x128xf32> -> vector<8x128xf32>
      %c0_35 = arith.constant 0 : index
      %c0_36 = arith.constant 0 : index
      %c0_37 = arith.constant 0 : index
      %c0_38 = arith.constant 0 : index
      %85 = vector.load %arg6[%c0_35, %c0_36, %c0_37, %c0_38] : memref<1x1x8x128xf32, #tpu.memory_space<vmem>>, vector<1x1x8x128xf32>
      %86 = vector.shape_cast %85 : vector<1x1x8x128xf32> to vector<8x128xf32>
      %87 = vector.shape_cast %84 : vector<8x128xf32> to vector<1x1x8x128xf32>
      tpu.vector_store %arg6[%c0_35, %c0_36, %c0_37, %c0_38], %87 {strides = array<i32>} : memref<1x1x8x128xf32, #tpu.memory_space<vmem>>, vector<1x1x8x128xf32>,
    } else {
    }
    return
  }
  func.func @transform_0(%arg0: i32, %arg1: i32, %arg2: i32) -> (i32, i32, i32, i32, i32) {
    %c1_i32 = arith.constant 1 : i32
    %0 = arith.muli %arg1, %c1_i32 : i32
    %1 = arith.addi %0, %arg2 : i32
    %c0_i32 = arith.constant 0 : i32
    %c0_i32_0 = arith.constant 0 : i32
    %c0_i32_1 = arith.constant 0 : i32
    %c0_i32_2 = arith.constant 0 : i32
    return %arg0, %1, %c0_i32, %c0_i32_0, %c0_i32_1 : i32, i32, i32, i32, i32
  }
  func.func @transform_1(%arg0: i32, %arg1: i32, %arg2: i32) -> (i32, i32, i32, i32, i32) {
    %c0_i32 = arith.constant 0 : i32
    %c0_i32_0 = arith.constant 0 : i32
    %c0_i32_1 = arith.constant 0 : i32
    %c0_i32_2 = arith.constant 0 : i32
    %c0_i32_3 = arith.constant 0 : i32
    %c0_i32_4 = arith.constant 0 : i32
    return %c0_i32, %c0_i32_0, %c0_i32_1, %c0_i32_2, %c0_i32_3 : i32, i32, i32, i32, i32
  }
  func.func @transform_2(%arg0: i32, %arg1: i32, %arg2: i32) -> (i32, i32, i32, i32) {
    %c0_i32 = arith.constant 0 : i32
    %c0_i32_0 = arith.constant 0 : i32
    %c0_i32_1 = arith.constant 0 : i32
    return %arg0, %arg1, %c0_i32, %c0_i32_0 : i32, i32, i32, i32
  }
  func.func @transform_3(%arg0: i32, %arg1: i32, %arg2: i32) -> (i32, i32, i32, i32) {
    %c0_i32 = arith.constant 0 : i32
    %c0_i32_0 = arith.constant 0 : i32
    %c0_i32_1 = arith.constant 0 : i32
    return %arg0, %arg1, %c0_i32, %c0_i32_0 : i32, i32, i32, i32
  }
}

module attributes {stable_mosaic.version = 11 : i64} {
  func.func @bn_relu_kernel(%arg0: i32, %arg1: i32, %arg2: memref<1x1x64x128xf32, #tpu.memory_space<vmem>>, %arg3: memref<1x128xf32, #tpu.memory_space<vmem>>, %arg4: memref<1x128xf32, #tpu.memory_space<vmem>>, %arg5: memref<1x1x64x128xf32, #tpu.memory_space<vmem>>) attributes {dimension_semantics = [#tpu.dimension_semantics<parallel>, #tpu.dimension_semantics<parallel>], iteration_bounds = array<i64: 2, 4>, scalar_prefetch = 0 : i64, scratch_operands = 0 : i64, tpu.core_type = #tpu.core_type<tc>, window_params = [{transform_indices = @transform_0, window_bounds = array<i64: 1, 1, 64, 128>}, {pipeline_mode = #tpu.pipeline_mode<synchronous>, transform_indices = @transform_1, window_bounds = array<i64: 1, 128>}, {pipeline_mode = #tpu.pipeline_mode<synchronous>, transform_indices = @transform_2, window_bounds = array<i64: 1, 128>}, {transform_indices = @transform_3, window_bounds = array<i64: 1, 1, 64, 128>}]} {
    %c0 = arith.constant 0 : index
    %c0_0 = arith.constant 0 : index
    %c0_1 = arith.constant 0 : index
    %c0_2 = arith.constant 0 : index
    %0 = vector.load %arg2[%c0, %c0_0, %c0_1, %c0_2] : memref<1x1x64x128xf32, #tpu.memory_space<vmem>>, vector<1x1x64x128xf32>
    %1 = vector.shape_cast %0 : vector<1x1x64x128xf32> to vector<64x128xf32>
    %c0_3 = arith.constant 0 : index
    %c0_4 = arith.constant 0 : index
    %2 = vector.load %arg3[%c0_3, %c0_4] : memref<1x128xf32, #tpu.memory_space<vmem>>, vector<1x128xf32>
    %3 = vector.broadcast %2 : vector<1x128xf32> to vector<64x128xf32>
    %4 = arith.mulf %1, %3 : vector<64x128xf32>
    %c0_5 = arith.constant 0 : index
    %c0_6 = arith.constant 0 : index
    %5 = vector.load %arg4[%c0_5, %c0_6] : memref<1x128xf32, #tpu.memory_space<vmem>>, vector<1x128xf32>
    %6 = vector.broadcast %5 : vector<1x128xf32> to vector<64x128xf32>
    %7 = arith.addf %4, %6 : vector<64x128xf32>
    %cst = arith.constant 0.000000e+00 : f32
    %8 = vector.broadcast %cst : f32 to vector<64x128xf32>
    %9 = arith.maximumf %7, %8 : vector<64x128xf32>
    %c0_7 = arith.constant 0 : index
    %c0_8 = arith.constant 0 : index
    %c0_9 = arith.constant 0 : index
    %c0_10 = arith.constant 0 : index
    %10 = vector.load %arg5[%c0_7, %c0_8, %c0_9, %c0_10] : memref<1x1x64x128xf32, #tpu.memory_space<vmem>>, vector<1x1x64x128xf32>
    %11 = vector.shape_cast %10 : vector<1x1x64x128xf32> to vector<64x128xf32>
    %12 = vector.shape_cast %9 : vector<64x128xf32> to vector<1x1x64x128xf32>
    tpu.vector_store %arg5[%c0_7, %c0_8, %c0_9, %c0_10], %12 {strides = array<i32>} : memref<1x1x64x128xf32, #tpu.memory_space<vmem>>, vector<1x1x64x128xf32>,
    return
  }
  func.func @transform_0(%arg0: i32, %arg1: i32) -> (i32, i32, i32, i32) {
    %c0_i32 = arith.constant 0 : i32
    %c0_i32_0 = arith.constant 0 : i32
    %c0_i32_1 = arith.constant 0 : i32
    return %arg0, %arg1, %c0_i32, %c0_i32_0 : i32, i32, i32, i32
  }
  func.func @transform_1(%arg0: i32, %arg1: i32) -> (i32, i32) {
    %c0_i32 = arith.constant 0 : i32
    %c0_i32_0 = arith.constant 0 : i32
    %c0_i32_1 = arith.constant 0 : i32
    return %c0_i32, %c0_i32_0 : i32, i32
  }
  func.func @transform_2(%arg0: i32, %arg1: i32) -> (i32, i32) {
    %c0_i32 = arith.constant 0 : i32
    %c0_i32_0 = arith.constant 0 : i32
    %c0_i32_1 = arith.constant 0 : i32
    return %c0_i32, %c0_i32_0 : i32, i32
  }
  func.func @transform_3(%arg0: i32, %arg1: i32) -> (i32, i32, i32, i32) {
    %c0_i32 = arith.constant 0 : i32
    %c0_i32_0 = arith.constant 0 : i32
    %c0_i32_1 = arith.constant 0 : i32
    return %arg0, %arg1, %c0_i32, %c0_i32_0 : i32, i32, i32, i32
  }
}

</mosaic_0001>

<bundles_post_ra>
// kernel: conv_module_forward.2
= control target key start
LH: loop header
LB: loop body
LE: loop exit
PB: predicated region body
PF: predicated region fallthrough
CT: control target
= control target key end

     0   :  { %s2317_s12 = smov 0   ;;  %s2319_s13 = smov 0   ;;  %s2792_s0 = inlined_call_operand.vmem [shape: bf16[2,6,10,10,64], index: 0, kind: input, shape index: {}]   ;;  %s2793_s1 = inlined_call_operand.vmem [shape: bf16[3,3,3,64,128], index: 1, kind: input, shape index: {}]   ;;  %s2794_s2 = inlined_call_operand.vmem [shape: f32[2,4,64,128], index: 2, kind: output, shape index: {0}]   ;;  %s2795_s3 = inlined_call_operand.vmem [shape: f32[2,4,8,128], index: 3, kind: output, shape index: {1}]  }
   0x1   :  { %s2321_s14 = smov 0   ;;  %s2323_s15 = smov 0  }
   0x2   :  { %s2325_s16 = smov 0   ;;  %s2327_s17 = smov 0  }
   0x3   :  { %s2329_s18 = smov 0  }
   0x4 LB: > { %s26_s19 = sadd.s32 1, %s2282_s15  ;;  %s29_s20 = sadd.s32 1, %s2286_s16  ;;  %s2294_s18 = sphi %s2329_s18, %s14_s18   ;;  %s2290_s17 = sphi %s2327_s17, %s2811_s17   ;;  %s2286_s16 = sphi %s2325_s16, %s2810_s16   ;;  %s2282_s15 = sphi %s2323_s15, %s2809_s15   ;;  %s2278_s14 = sphi %s2321_s14, %s2808_s14   ;;  %s2274_s13 = sphi %s2319_s13, %s2807_s13   ;;  %s2270_s12 = sphi %s2317_s12, %s2806_s12  }
   0x5   : > { %p27_p0 = scmp.ge.s32.totalorder %s26_s19, 3  ;;  %p1790_p1 = scmp.ge.s32.totalorder %s2294_s18, 1 }
   0x6   : > { %p173_p2 = scmp.lt.s32.totalorder %s2294_s18, 25  ;;  %s33_s21 = sadd.s32 1, %s2290_s17 }
   0x7   : > { %s2813_s19 = smov (%p27_p0, %s26_s19), 0  ;;  %s2815_s20 = smov (!%p27_p0, %s29_s20), %s2286_s16 }
   0x8   : > { %p174_p3 = pnand %p1790_p1, %p173_p2  ;;  %p31_p4 = scmp.ge.s32.totalorder %s2815_s20, 4 }
   0xa   : > { %s2817_s20 = smov (%p31_p4, %s2815_s20), 0  ;;  %s2819_s21 = smov (!%p31_p4, %s33_s21), %s2290_s17 }
   0xb   : > { %2796 = sst [smem:[#allocation2_spill]] %s2817_s20  ;;  %p35_p5 = scmp.ge.s32.totalorder %s2819_s21, 2 }
   0xc   : > { %177 = sbr.rel (%p174_p3) target bundleno = 399 (0x18f), region = 28 }
   0xd   : > { %s2821_s21 = smov (%p35_p5, %s2819_s21), 0 }
   0xe   : > { %2797 = sst [smem:[#allocation3_spill]] %s2821_s21 }
  0x11   : > { %s214_s22 = sadd.s32 %s2270_s12, %s2274_s13  ;;  %p215_p6 = scmp.lt.s32.totalorder %s2278_s14, 1 }
  0x12   : > { %p217_p7 = scmp.lt.s32.totalorder %s214_s22, 5  ;;  %p227_p8 = scmp.lt.s32.totalorder %s2274_s13, 3 }
  0x13   : > { %s2823_s14 = smov (!%p215_p6, %s2278_s14), 1  ;;  %p1797_p9 = scmp.ne.s32.totalorder %s2270_s12, 0 }
  0x14   : > { %s2825_s22 = smov (!%p217_p7, %s214_s22), 5  ;;  %s2137_s23 = smul.u32 120, %s2823_s14 }
  0x15   : > { %s2136_s24 = smul.u32 20, %s2825_s22  ;;  %s1793_s25 = sshll.u32 %s2823_s14, 5 }
  0x16   : > { %s2827_s13 = smov (!%p227_p8, %s2274_s13), 3  ;;  %s1795_s27 = sshll.u32 %s2823_s14, 2 }
  0x17   : > { %s221_s26 = sadd.s32 %s2137_s23, %s2136_s24  ;;  %s1792_s29 = sshll.u32 %s2827_s13, 3 }
  0x18   : > { %s1791_s28 = sshll.u32 %s221_s26, 2  ;;  %s231_s6 = sadd.s32 %s1793_s25, %s1792_s29 }
  0x19   : > { %s2370_s5 = scalar_lea.vmem %s2792_s0, %s1791_s28  ;;  %s1794_s7 = sshll.u32 %s231_s6, 3 }
  0x1a   : > { %s239_s8 = sadd.s32 %s1795_s27, %s2827_s13  ;;  %s2375_s11 = scalar_lea.vmem %s2794_s2, %s1794_s7 }
  0x1b   : > { %s1796_s22 = sshll.u32 %s239_s8, 3  ;;  %246 = sbr.rel (%p1797_p9) target bundleno = 37 (0x25), region = 32 }
  0x1c   : > { %s2380_s14 = scalar_lea.vmem %s2795_s3, %s1796_s22 }
  0x20   : > { %v2296_v0 = vmov 0.0  }
  0x21   : > { %247 = vst [vmem:[%s2375_s11] sm:$0xff] %v2296_v0  ;;  %248 = vst [vmem:[%s2375_s11 + $0x8] sm:$0xff] %v2296_v0 }
  0x22   : > { %249 = vst [vmem:[%s2375_s11 + $0x10] sm:$0xff] %v2296_v0  ;;  %250 = vst [vmem:[%s2375_s11 + $0x18] sm:$0xff] %v2296_v0 }
  0x23   : > { %251 = vst [vmem:[%s2375_s11 + $0x20] sm:$0xff] %v2296_v0  ;;  %252 = vst [vmem:[%s2375_s11 + $0x28] sm:$0xff] %v2296_v0 }
  0x24   : > { %253 = vst [vmem:[%s2375_s11 + $0x30] sm:$0xff] %v2296_v0  ;;  %254 = vst [vmem:[%s2375_s11 + $0x38] sm:$0xff] %v2296_v0 }
  0x25 PF: > { %s1911_s13 = smul.u32 288, %s2270_s12  ;;  %v2393_v1 = vld [vmem:[%s2370_s5] sm:$0xf]  ;;  %v2396_v2 = vld [vmem:[%s2370_s5 + $0x8] sm:$0xf]  ;;  %vm501_vm0 = vcmask 523264  }
  0x26   : > { %v2404_v3 = vld [vmem:[%s2370_s5 + $0x4] sm:$0x1]  ;;  %v1811_v4 = vcombine.low %v2393_v1, %v2396_v2  ;;  %v354_v6 = vshrl.u32 %v2393_v1, 16  ;;  %v357_v8 = vshll.u32 %v2393_v1, 16  ;;  %v2417_v14 = vld [vmem:[%s2370_s5 + $0xc] sm:$0x1] }
  0x27   : > { %s2401_s23 = scalar_lea.vmem %s2793_s1, %s1911_s13  ;;  %v363_v15 = vshll.u32 %v2404_v3, 16  ;;  %v2422_v17 = vld [vmem:[%s2370_s5 + $0x10] sm:$0xf]  ;;  %v2425_v18 = vld [vmem:[%s2370_s5 + $0x14] sm:$0x1]  ;;  %v368_v20 = vshrl.u32 %v2396_v2, 16 }
  0x28   : > { %v2195_v5 = vld [vmem:[%s2401_s23 + $0x38] sm:$0xff]   ;;  %2008 = vmatprep.mubr.msk.bf16.mxu1 %vm501_vm0, %v1811_v4  ;;  %v2197_v9 = vld [vmem:[%s2401_s23 + $0x30] sm:$0xff]   ;;  %v356_v10 = vrot.slane %v354_v6, 4  ;;  %v359_v12 = vrot.slane %v357_v8, 5  ;;  %v2199_v13 = vld [vmem:[%s2401_s23 + $0x28] sm:$0xff]   ;;  %v371_v30 = vshll.u32 %v2396_v2, 16 }
  0x29   : > { %v2196_v7 = vld [vmem:[%s2401_s23 + $0x18] sm:$0xff]   ;;  %1984 = vmatprep.subr.bf16.mxu0 %v2195_v5  ;;  %v2198_v11 = vld [vmem:[%s2401_s23 + $0x10] sm:$0xff]   ;;  %v2200_v16 = vld [vmem:[%s2401_s23 + $0x8] sm:$0xff]   ;;  %v365_v23 = vrot.slane %v363_v15, 5  ;;  %vm350_vm1 = vsmask.f32 3328 }
  0x2a   : > { %2000 = vmatprep.subr.bf16.mxu1 %v2196_v7  ;;  %1985 = vmatpush3.bf16.msra.mxu0 %v2195_v5  ;;  %v360_v19 = vor.u32 %v359_v12, %v356_v10  ;;  %v2429_v21 = vld [vmem:[%s2370_s5 + $0x18] sm:$0xf]  ;;  %v2201_v24 = vld [vmem:[%s2401_s23 + $0x20] sm:$0xff]   ;;  %v2433_v25 = vld [vmem:[%s2370_s5 + $0x1c] sm:$0x1]  ;;  %v370_v29 = vrot.slane %v368_v20, 4 }
  0x2b   : > { %2001 = vmatpush3.bf16.msra.mxu1 %v2196_v7  ;;  %1986 = vmatprep.subr.bf16.mxu0 %v2197_v9  ;;  %v2436_v26 = vld [vmem:[%s2370_s5 + $0x20] sm:$0xf]  ;;  %v2440_v28 = vld [vmem:[%s2370_s5 + $0x24] sm:$0x1]  ;;  %vm351_vm2 = vsmask.f32 7440  ;;  %v2457_v40 = vcombine.low %v2422_v17, %v2429_v21 }
  0x2c   : > { %2002 = vmatprep.subr.bf16.mxu1 %v2198_v11  ;;  %v361_v22 = vrot.slane %v360_v19, 4  ;;  %v2202_v27 = vld [vmem:[%s2401_s23] sm:$0xff]   ;;  %v377_v31 = vshll.u32 %v2417_v14, 16  ;;  %vm2444_vm3 = vmor %vm350_vm1, %vm351_vm2  ;;  %v382_v33 = vshrl.u32 %v2422_v17, 16  ;;  %v385_v34 = vshll.u32 %v2422_v17, 16  ;;  %v2460_v41 = vld [vmem:[%s2401_s23 + $0x58] sm:$0xff]  }
  0x2d   : > { %v391_v35 = vshll.u32 %v2425_v18, 16  ;;  %v396_v36 = vshrl.u32 %v2429_v21, 16  ;;  %v373_v38 = vrot.slane %v371_v30, 5  ;;  %v399_v39 = vshll.u32 %v2429_v21, 16  ;;  %v2206_v50 = vld [vmem:[%s2401_s23 + $0x78] sm:$0xff]   ;;  %v2208_v63 = vld [vmem:[%s2401_s23 + $0x70] sm:$0xff]  }
  0x2e   : > { %1987 = vmatpush3.bf16.msra.mxu0 %v2197_v9  ;;  %v366_v37 = vsel %vm2444_vm3, %v361_v22, %v365_v23  ;;  %v379_v42 = vrot.slane %v377_v31, 5  ;;  %v384_v43 = vrot.slane %v382_v33, 4  ;;  %v387_v44 = vrot.slane %v385_v34, 5  ;;  %v2207_v6 = vld [vmem:[%s2401_s23 + $0x50] sm:$0xff]   ;;  %v2480_v7 = vld [vmem:[%s2370_s5 + $0x28] sm:$0xf] }
  0x2f   : > { %2003 = vmatpush3.bf16.msra.mxu1 %v2198_v11  ;;  %1988 = vmatprep.subr.bf16.mxu0 %v2199_v13  ;;  %v398_v45 = vrot.slane %v396_v36, 4  ;;  %v374_v46 = vor.u32 %v373_v38, %v370_v29  ;;  %v401_v47 = vrot.slane %v399_v39, 5  ;;  %v405_v48 = vshll.u32 %v2433_v25, 16  ;;  %v2483_v8 = vld [vmem:[%s2370_s5 + $0x2c] sm:$0x1]  ;;  %p1908_p10 = scmp.ne.s32.totalorder %s2270_s12, 2 }
  0x30   : > { %2004 = vmatprep.subr.bf16.mxu1 %v2200_v16  ;;  %v410_v49 = vshrl.u32 %v2436_v26, 16  ;;  %v388_v51 = vor.u32 %v387_v44, %v384_v43  ;;  %v393_v52 = vrot.slane %v391_v35, 5  ;;  %v413_v53 = vshll.u32 %v2436_v26, 16  ;;  %v2493_v12 = vld [vmem:[%s2370_s5 + $0x30] sm:$0xf]  ;;  %v2211_v31 = vld [vmem:[%s2401_s23 + $0x48] sm:$0xff]  }
  0x31   : > { %v419_v54 = vshll.u32 %v2440_v28, 16  ;;  %v375_v55 = vrot.slane %v374_v46, 4  ;;  %v402_v56 = vor.u32 %v401_v47, %v398_v45  ;;  %v407_v57 = vrot.slane %v405_v48, 5  ;;  %v2503_v20 = vld [vmem:[%s2370_s5 + $0x34] sm:$0x1] }
  0x32   : > { %1989 = vmatpush3.bf16.msra.mxu0 %v2199_v13  ;;  %v412_v58 = vrot.slane %v410_v49, 4  ;;  %v389_v59 = vrot.slane %v388_v51, 4  ;;  %v415_v60 = vrot.slane %v413_v53, 5  ;;  %vm708_vm4 = vcmask 1042432   ;;  %v2212_v13 = vld [vmem:[%s2401_s23 + $0x68] sm:$0xff]  }
  0x33   : > { %2005 = vmatpush3.bf16.msra.mxu1 %v2200_v16  ;;  %1990 = vmatprep.subr.bf16.mxu0 %v2201_v24  ;;  %v2470_v61 = vsel %vm2444_vm3, %v375_v55, %v379_v42  ;;  %v403_v62 = vrot.slane %v402_v56, 4  ;;  %v421_v10 = vrot.slane %v419_v54, 5  ;;  %vm709_vm5 = vcmask 1046532  }
  0x34   : > { %2006 = vmatprep.subr.bf16.mxu1 %v2202_v27  ;;  %v2475_v0 = vsel %vm2444_vm3, %v389_v59, %v393_v52  ;;  %v416_v4 = vor.u32 %v415_v60, %v412_v58  ;;  %v1799_v5 = vcombine.low %v366_v37, %v2470_v61  ;;  %v713_v11 = vrot.slane %v2404_v3, 5  ;;  %v2506_v3 = vld [vmem:[%s2370_s5 + $0x38] sm:$0xf]  ;;  %v2214_v37 = vld [vmem:[%s2401_s23 + $0x60] sm:$0xff]   ;;  %vm2543_vm6 = vmor %vm708_vm4, %vm709_vm5 }
  0x35   : > { %v2487_v9 = vsel %vm2444_vm3, %v403_v62, %v407_v57  ;;  %v424_v19 = vshrl.u32 %v2480_v7, 16  ;;  %v427_v22 = vshll.u32 %v2480_v7, 16  ;;  %v433_v23 = vshll.u32 %v2483_v8, 16  ;;  %v2213_v52 = vld [vmem:[%s2401_s23 + $0x40] sm:$0xff]  }
  0x36   : > { %1991 = vmatpush3.bf16.msra.mxu0 %v2201_v24  ;;  %v417_v15 = vrot.slane %v416_v4, 4  ;;  %v2498_v16 = vcombine.low %v2475_v0, %v2487_v9  ;;  %1992 = vmatprep.mubr.msk.bf16.mxu0 %vm501_vm0, %v1799_v5  ;;  %v2511_v24 = vld [vmem:[%s2370_s5 + $0x3c] sm:$0x1]  ;;  %v2518_v30 = vcombine.low %v2436_v26, %v2480_v7  ;;  %v1843_v33 = vcombine.low %v2396_v2, %v2422_v17 }
  0x37   : > { %2007 = vmatpush3.bf16.msra.mxu1 %v2202_v27  ;;  %2016 = vmatprep.subr.bf16.mxu0 %v2460_v41  ;;  %v717_v27 = vrot.slane %v2417_v14, 5  ;;  %v426_v29 = vrot.slane %v424_v19, 4  ;;  %v429_v35 = vrot.slane %v427_v22, 5  ;;  %v435_v14 = vrot.slane %v433_v23, 5  ;;  %v2217_v19 = vld [vmem:[%s2401_s23 + $0x98] sm:$0xff]  }
  0x38   : > { %2032 = vmatprep.subr.bf16.mxu1 %v2206_v50  ;;  %v2525_v34 = vsel %vm2444_vm3, %v417_v15, %v421_v10  ;;  %v438_v36 = vshrl.u32 %v2493_v12, 16  ;;  %v441_v38 = vshll.u32 %v2493_v12, 16  ;;  %v447_v39 = vshll.u32 %v2503_v20, 16 }
  0x39   : > { %1993 = vmatmul.mubr.msk.bf16.vlgmr.msra.gmra.mxu0 %vm501_vm0, %v2498_v16  ;;  %v452_v42 = vshrl.u32 %v2506_v3, 16  ;;  %v455_v43 = vshll.u32 %v2506_v3, 16  ;;  %v430_v44 = vor.u32 %v429_v35, %v426_v29  ;;  %v461_v45 = vshll.u32 %v2511_v24, 16 }
  0x3a   : > { %2009 = vmatmul.mubr.msk.bf16.vlgmr.msra.gmra.mxu1 %vm501_vm0, %v2457_v40  ;;  %2017 = vmatpush3.bf16.msra.mxu0 %v2460_v41  ;;  %v440_v41 = vrot.slane %v438_v36, 4  ;;  %v2539_v46 = vcombine.low %v2493_v12, %v2506_v3  ;;  %v443_v48 = vrot.slane %v441_v38, 5  ;;  %v449_v49 = vrot.slane %v447_v39, 5  ;;  %v2224_v36 = vld [vmem:[%s2401_s23 + $0xa8] sm:$0xff]  }
  0x3b   : > { %2033 = vmatpush3.bf16.msra.mxu1 %v2206_v50  ;;  %2018 = vmatprep.subr.bf16.mxu0 %v2207_v6  ;;  %v454_v50 = vrot.slane %v452_v42, 4  ;;  %v457_v51 = vrot.slane %v455_v43, 5  ;;  %v431_v53 = vrot.slane %v430_v44, 4  ;;  %v463_v54 = vrot.slane %v461_v45, 5  ;;  %v2219_v43 = vld [vmem:[%s2401_s23 + $0x90] sm:$0xff]  }
  0x3c   : > { %2034 = vmatprep.subr.bf16.mxu1 %v2208_v63  ;;  %2012 = vmatprep.mubr.msk.bf16.mxu1 %vm501_vm0, %v2518_v30  ;;  %v1823_v55 = vrot.slane %v2393_v1, 9  ;;  %v1824_v56 = vrot.slane %v2396_v2, 9  ;;  %v444_v57 = vor.u32 %v443_v48, %v440_v41  ;;  %v1825_v59 = vrot.slane %v2422_v17, 9  ;;  %v2218_v1 = vld [vmem:[%s2401_s23 + $0xb8] sm:$0xff]   ;;  %v2223_v48 = vld [vmem:[%s2401_s23 + $0x88] sm:$0xff]  }
  0x3d   : > { %v458_v58 = vor.u32 %v457_v51, %v454_v50  ;;  %v2555_v60 = vsel %vm2444_vm3, %v431_v53, %v435_v14  ;;  %v721_v5 = vrot.slane %v2425_v18, 5  ;;  %v725_v10 = vrot.slane %v2433_v25, 5  ;;  %v2225_v50 = vld [vmem:[%s2401_s23 + $0x80] sm:$0xff]   ;;  %v2228_v51 = vld [vmem:[%s2401_s23 + $0xf8] sm:$0xff]  }
  0x3e   : > { %2019 = vmatpush3.bf16.msra.mxu0 %v2207_v6  ;;  %v714_v62 = vsel %vm2543_vm6, %v1823_v55, %v713_v11  ;;  %v2567_v2 = vcombine.low %v2525_v34, %v2555_v60  ;;  %v445_v17 = vrot.slane %v444_v57, 4  ;;  %v1826_v6 = vrot.slane %v2429_v21, 9 }
  0x3f   : > { %2035 = vmatpush3.bf16.msra.mxu1 %v2208_v63  ;;  %2020 = vmatprep.subr.bf16.mxu0 %v2211_v31  ;;  %v2561_v63 = vsel %vm2543_vm6, %v1824_v56, %v717_v27  ;;  %v459_v4 = vrot.slane %v458_v58, 4  ;;  %v1827_v11 = vrot.slane %v2436_v26, 9  ;;  %v729_v25 = vrot.slane %v2440_v28, 5  ;;  %v2220_v28 = vld [vmem:[%s2401_s23 + $0xb0] sm:$0xff]   ;;  %v272_v56 = vld [vmem:[%s2370_s5 + $0x44] sm:$0x1] }
  0x40   : > { %2036 = vmatprep.subr.bf16.mxu1 %v2212_v13  ;;  %1996 = vmatprep.mubr.msk.bf16.mxu0 %vm501_vm0, %v2567_v2  ;;  %v1831_v18 = vcombine.low %v714_v62, %v2561_v63  ;;  %v1844_v23 = vcombine.low %v2429_v21, %v2436_v26  ;;  %v1828_v27 = vrot.slane %v2480_v7, 9  ;;  %v733_v29 = vrot.slane %v2483_v8, 5  ;;  %v2611_v8 = vld [vmem:[%s2370_s5 + $0x40] sm:$0xf]  ;;  %v2230_v62 = vld [vmem:[%s2401_s23 + $0xf0] sm:$0xff]  }
  0x41   : > { %v2581_v15 = vsel %vm2444_vm3, %v459_v4, %v463_v54  ;;  %v726_v21 = vsel %vm2543_vm6, %v1826_v6, %v725_v10  ;;  %v730_v26 = vsel %vm2543_vm6, %v1827_v11, %v729_v25  ;;  %v1829_v14 = vrot.slane %v2493_v12, 9  ;;  %v2232_v10 = vld [vmem:[%s2401_s23 + $0xe8] sm:$0xff]   ;;  %v2229_v25 = vld [vmem:[%s2401_s23 + $0xd0] sm:$0xff]  }
  0x42   : > { %2013 = vmatmul.mubr.msk.bf16.gmra.mxu1 %vm501_vm0, %v2539_v46  ;;  %2021 = vmatpush3.bf16.msra.mxu0 %v2211_v31  ;;  %v1845_v31 = vcombine.low %v2480_v7, %v2493_v12  ;;  %v734_v7 = vsel %vm2543_vm6, %v1828_v27, %v733_v29  ;;  %v737_v38 = vrot.slane %v2503_v20, 5  ;;  %v1830_v39 = vrot.slane %v2506_v3, 9  ;;  %v2226_v12 = vld [vmem:[%s2401_s23 + $0xa0] sm:$0xff]  }
  0x43   : > { %2037 = vmatpush3.bf16.msra.mxu1 %v2212_v13  ;;  %2040 = vmatprep.mubr.msk.bf16.mxu1 %vm501_vm0, %v1843_v33  ;;  %v2577_v13 = vsel %vm2444_vm3, %v445_v17, %v449_v49  ;;  %v722_v33 = vsel %vm2543_vm6, %v1825_v59, %v721_v5  ;;  %v741_v42 = vrot.slane %v2511_v24, 5  ;;  %v1846_v44 = vcombine.low %v2506_v3, %v2611_v8 }
  0x44   : > { %2038 = vmatprep.subr.bf16.mxu1 %v2214_v37  ;;  %2022 = vmatprep.subr.bf16.mxu0 %v2213_v52  ;;  %v2588_v22 = vcombine.low %v2577_v13, %v2581_v15  ;;  %v2613_v35 = vcombine.low %v722_v33, %v726_v21  ;;  %v1868_v41 = vcombine.low %v2561_v63, %v722_v33  ;;  %v980_v24 = vshrl.u32 %v2611_v8, 16  ;;  %v2652_v63 = vld [vmem:[%s2370_s5 + $0x48] sm:$0xf] }
  0x45   : > { %v738_v20 = vsel %vm2543_vm6, %v1829_v14, %v737_v38  ;;  %v742_v3 = vsel %vm2543_vm6, %v1830_v39, %v741_v42  ;;  %v983_v45 = vshll.u32 %v2611_v8, 16  ;;  %v1869_v55 = vcombine.low %v726_v21, %v730_v26  ;;  %v2235_v21 = vld [vmem:[%s2401_s23 + $0x118] sm:$0xff]  }
  0x46   : > { %1997 = vmatmul.mubr.msk.bf16.gmra.mxu0 %vm501_vm0, %v2588_v22  ;;  %v2640_v49 = vcombine.low %v738_v20, %v742_v3  ;;  %v982_v53 = vrot.slane %v980_v24, 4  ;;  %v1870_v57 = vcombine.low %v734_v7, %v738_v20  ;;  %v1867_v58 = vrot.slane %v2611_v8, 9 }
  0x47   : > { %2039 = vmatpush3.bf16.msra.mxu1 %v2214_v37  ;;  %2023 = vmatpush3.bf16.msra.mxu0 %v2213_v52  ;;  %v2617_v37 = vcombine.low %v730_v26, %v734_v7  ;;  %v1855_v52 = vcombine.low %v2470_v61, %v2475_v0  ;;  %v985_v54 = vrot.slane %v983_v45, 5  ;;  %v1110_v59 = vrot.slane %v272_v56, 5  ;;  %v2233_v26 = vld [vmem:[%s2401_s23 + $0xc0] sm:$0xff]  }
  0x48   : > { %2064 = vmatprep.subr.bf16.mxu1 %v2218_v1  ;;  %2024 = vmatprep.mubr.msk.bf16.mxu0 %vm501_vm0, %v1831_v18  ;;  %v989_v0 = vshll.u32 %v272_v56, 16  ;;  %v1330_v4 = vshrl.u32 %v2652_v63, 16  ;;  %v1333_v5 = vshll.u32 %v2652_v63, 16  ;;  %v1856_v6 = vcombine.low %v2487_v9, %v2525_v34  ;;  %v274_v9 = vld [vmem:[%s2370_s5 + $0x4c] sm:$0x1]  ;;  %v2234_v34 = vld [vmem:[%s2401_s23 + $0xe0] sm:$0xff]  }
  0x49   : > { %2048 = vmatprep.subr.bf16.mxu0 %v2217_v19  ;;  %v986_v61 = vor.u32 %v985_v54, %v982_v53  ;;  %v2660_v17 = vsel %vm2543_vm6, %v1867_v58, %v1110_v59  ;;  %v1857_v11 = vcombine.low %v2555_v60, %v2577_v13  ;;  %v2231_v13 = vld [vmem:[%s2401_s23 + $0xc8] sm:$0xff]   ;;  %v1898_v39 = vrot.slane %v2652_v63, 9 }
  0x4a   : > { %2041 = vmatmul.mubr.msk.bf16.vlgmr.msra.gmra.mxu1 %vm501_vm0, %v1844_v23  ;;  %v1871_v23 = vcombine.low %v742_v3, %v2660_v17  ;;  %v1332_v27 = vrot.slane %v1330_v4, 4  ;;  %v1335_v29 = vrot.slane %v1333_v5, 5 }
  0x4b   : > { %2065 = vmatpush3.bf16.msra.mxu1 %v2218_v1  ;;  %2044 = vmatprep.mubr.msk.bf16.mxu1 %vm501_vm0, %v1845_v31  ;;  %v2227_v1 = vld [vmem:[%s2401_s23 + $0xd8] sm:$0xff]   ;;  %v987_v18 = vrot.slane %v986_v61, 4 }
  0x4c   : > { %2066 = vmatprep.subr.bf16.mxu1 %v2220_v28  ;;  %v1336_v31 = vor.u32 %v1335_v29, %v1332_v27 }
  0x4e   : > { %2025 = vmatmul.mubr.msk.bf16.vlgmr.msra.gmra.mxu0 %vm501_vm0, %v2613_v35  ;;  %v1337_v7 = vrot.slane %v1336_v31, 4 }
  0x4f   : > { %2067 = vmatpush3.bf16.msra.mxu1 %v2220_v28  ;;  %2049 = vmatpush3.bf16.msra.mxu0 %v2217_v19  ;;  %v991_v19 = vrot.slane %v989_v0, 5  ;;  %v1339_v28 = vshll.u32 %v274_v9, 16 }
  0x50   : > { %2068 = vmatprep.subr.bf16.mxu1 %v2224_v36  ;;  %2028 = vmatprep.mubr.msk.bf16.mxu0 %vm501_vm0, %v2617_v37 }
  0x51   : > { %2050 = vmatprep.subr.bf16.mxu0 %v2219_v43  ;;  %v992_v60 = vsel %vm2444_vm3, %v987_v18, %v991_v19  ;;  %v1341_v14 = vrot.slane %v1339_v28, 5 }
  0x52   : > { %2045 = vmatmul.mubr.msk.bf16.gmra.mxu1 %vm501_vm0, %v1846_v44  ;;  %v1858_v33 = vcombine.low %v2581_v15, %v992_v60  ;;  %v2238_v15 = vld [vmem:[%s2401_s23 + $0x108] sm:$0xff]  }
  0x53   : > { %2069 = vmatpush3.bf16.msra.mxu1 %v2224_v36  ;;  %2072 = vmatprep.mubr.msk.bf16.mxu1 %vm501_vm0, %v1868_v41  ;;  %v2236_v36 = vld [vmem:[%s2401_s23 + $0x110] sm:$0xff]  }
  0x54   : > { %2070 = vmatprep.subr.bf16.mxu1 %v2226_v12  ;;  %2051 = vmatpush3.bf16.msra.mxu0 %v2219_v43 }
  0x55   : > { %2052 = vmatprep.subr.bf16.mxu0 %v2223_v48 }
  0x56   : > { %2029 = vmatmul.mubr.msk.bf16.gmra.mxu0 %vm501_vm0, %v2640_v49 }
  0x57   : > { %2071 = vmatpush3.bf16.msra.mxu1 %v2226_v12  ;;  %2056 = vmatprep.mubr.msk.bf16.mxu0 %vm501_vm0, %v1855_v52 }
  0x58   : > { %2096 = vmatprep.subr.bf16.mxu1 %v2228_v51  ;;  %2053 = vmatpush3.bf16.msra.mxu0 %v2223_v48 }
  0x59   : > { %2054 = vmatprep.subr.bf16.mxu0 %v2225_v50 }
  0x5a   : > { %2073 = vmatmul.mubr.msk.bf16.vlgmr.msra.gmra.mxu1 %vm501_vm0, %v1869_v55 }
  0x5b   : > { %2097 = vmatpush3.bf16.msra.mxu1 %v2228_v51  ;;  %2076 = vmatprep.mubr.msk.bf16.mxu1 %vm501_vm0, %v1870_v57 }
  0x5c   : > { %2098 = vmatprep.subr.bf16.mxu1 %v2230_v62  ;;  %2055 = vmatpush3.bf16.msra.mxu0 %v2225_v50 }
  0x5d   : > { %2080 = vmatprep.subr.bf16.mxu0 %v2227_v1 }
  0x5f   : > { %2099 = vmatpush3.bf16.msra.mxu1 %v2230_v62  ;;  %2057 = vmatmul.mubr.msk.bf16.vlgmr.msra.gmra.mxu0 %vm501_vm0, %v1856_v6 }
  0x60   : > { %2100 = vmatprep.subr.bf16.mxu1 %v2232_v10  ;;  %2081 = vmatpush3.bf16.msra.mxu0 %v2227_v1 }
  0x61   : > { %2060 = vmatprep.mubr.msk.bf16.mxu0 %vm501_vm0, %v1857_v11  ;;  %2082 = vmatprep.subr.bf16.mxu0 %v2229_v25 }
  0x62   : > { %2077 = vmatmul.mubr.msk.bf16.gmra.mxu1 %vm501_vm0, %v1871_v23 }
  0x63   : > { %2101 = vmatpush3.bf16.msra.mxu1 %v2232_v10  ;;  %2104 = vmatprep.mubr.msk.bf16.mxu1 %vm501_vm0, %v2498_v16  ;;  %v1342_v16 = vsel %vm2444_vm3, %v1337_v7, %v1341_v14 }
  0x64   : > { %2102 = vmatprep.subr.bf16.mxu1 %v2234_v34  ;;  %2083 = vmatpush3.bf16.msra.mxu0 %v2229_v25  ;;  %v1889_v38 = vcombine.low %v992_v60, %v1342_v16 }
  0x65   : > { %2084 = vmatprep.subr.bf16.mxu0 %v2231_v13 }
  0x67   : > { %2103 = vmatpush3.bf16.msra.mxu1 %v2234_v34  ;;  %2061 = vmatmul.mubr.msk.bf16.gmra.mxu0 %vm501_vm0, %v1858_v33 }
  0x68   : > { %2128 = vmatprep.subr.bf16.mxu1 %v2235_v21  ;;  %2085 = vmatpush3.bf16.msra.mxu0 %v2231_v13 }
  0x69   : > { %2088 = vmatprep.mubr.msk.bf16.mxu0 %vm501_vm0, %v2457_v40  ;;  %2086 = vmatprep.subr.bf16.mxu0 %v2233_v26  ;;  %v1448_v40 = vrot.slane %v274_v9, 5 }
  0x6a   : > { %2105 = vmatmul.mubr.msk.bf16.vlgmr.msra.gmra.mxu1 %vm501_vm0, %v2567_v2  ;;  %v2239_v2 = vld [vmem:[%s2401_s23 + $0x100] sm:$0xff]  }
  0x6b   : > { %2132 = vmatpush3.bf16.msra.mxu1 %v2235_v21  ;;  %2108 = vmatprep.mubr.msk.bf16.mxu1 %vm501_vm0, %v2588_v22  ;;  %v1449_v32 = vsel %vm2543_vm6, %v1898_v39, %v1448_v40  ;;  %v1880_v22 = vcombine.low %v2611_v8, %v2652_v63 }
  0x6c   : > { %2129 = vmatprep.subr.bf16.mxu1 %v2236_v36  ;;  %2087 = vmatpush3.bf16.msra.mxu0 %v2233_v26 }
  0x6d   : > { %2112 = vmatprep.subr.bf16.mxu0 %v2235_v21 }
  0x6f   : > { %2133 = vmatpush3.bf16.msra.mxu1 %v2236_v36  ;;  %2089 = vmatmul.mubr.msk.bf16.vlgmr.msra.gmra.mxu0 %vm501_vm0, %v2518_v30  ;;  %v1899_v30 = vcombine.low %v2660_v17, %v1449_v32 }
  0x70   : > { %2130 = vmatprep.subr.bf16.mxu1 %v2238_v15  ;;  %2113 = vmatpush3.bf16.msra.mxu0 %v2235_v21 }
  0x71   : > { %2092 = vmatprep.mubr.msk.bf16.mxu0 %vm501_vm0, %v2539_v46  ;;  %2114 = vmatprep.subr.bf16.mxu0 %v2236_v36 }
  0x72   : > { %2109 = vmatmul.mubr.msk.bf16.gmra.mxu1 %vm501_vm0, %v1889_v38 }
  0x73   : > { %2134 = vmatpush3.bf16.msra.mxu1 %v2238_v15  ;;  %2124 = vmatprep.mubr.msk.bf16.mxu1 %vm501_vm0, %v2640_v49 }
  0x74   : > { %2131 = vmatprep.subr.bf16.mxu1 %v2239_v2  ;;  %2115 = vmatpush3.bf16.msra.mxu0 %v2236_v36 }
  0x75   : > { %2116 = vmatprep.subr.bf16.mxu0 %v2238_v15 }
  0x77   : > { %2135 = vmatpush3.bf16.msra.mxu1 %v2239_v2  ;;  %2093 = vmatmul.mubr.msk.bf16.gmra.mxu0 %vm501_vm0, %v1880_v22 }
  0x78   : > { %2117 = vmatpush3.bf16.msra.mxu0 %v2238_v15  ;;  %2120 = vmatprep.mubr.msk.bf16.mxu0 %vm501_vm0, %v2613_v35 }
  0x79   : > { %2118 = vmatprep.subr.bf16.mxu0 %v2239_v2 }
  0x7a   : > { %2125 = vmatmul.mubr.msk.bf16.vlgmr.msra.gmra.mxu1 %vm501_vm0, %v1899_v30 }
  0x7c   : > { %2119 = vmatpush3.bf16.msra.mxu0 %v2239_v2 }
  0x7f   : > { %2121 = vmatmul.mubr.msk.bf16.vlgmr.msra.gmra.mxu0 %vm501_vm0, %v2617_v37 }
  0xf9   : > { %v1994_v8 = vpop.f32.mrf.mxu0 }
  0xfa   : > { %v2010_v46 = vpop.f32.mrf.mxu1 }
  0xfb   : > { %v548_v43 = vpop.f32.mrf.mxu0  ;;  %v678_v28 = vadd.f32 %v2010_v46, %v1994_v8 }
  0xfc   : > { %v669_v47 = vpop.f32.mrf.mxu1 }
  0xfd   : > { %v1995_v41 = vpop.f32.mrf.mxu0  ;;  %v670_v14 = vadd.f32 %v669_v47, %v548_v43 }
  0xfe   : > { %v2011_v42 = vpop.f32.mrf.mxu1 }
  0xff   : > { %v551_v3 = vpop.f32.mrf.mxu0  ;;  %v681_v40 = vadd.f32 %v2011_v42, %v1995_v41 }
 0x100   : > { %v672_v44 = vpop.f32.mrf.mxu1 }
 0x101   : > { %v673_v8 = vadd.f32 %v672_v44, %v551_v3 }
 0x102   : > { %v2014_v12 = vpop.f32.mrf.mxu1 }
 0x104   : > { %v685_v20 = vpop.f32.mrf.mxu1 }
 0x106   : > { %v2015_v24 = vpop.f32.mrf.mxu1  ;;  %v1998_v35 = vpop.f32.mrf.mxu0 }
 0x107   : > { %v694_v31 = vadd.f32 %v2014_v12, %v1998_v35 }
 0x108   : > { %v688_v45 = vpop.f32.mrf.mxu1  ;;  %v564_v48 = vpop.f32.mrf.mxu0 }
 0x109   : > { %v686_v26 = vadd.f32 %v685_v20, %v564_v48 }
 0x10a   : > { %v2042_v49 = vpop.f32.mrf.mxu1  ;;  %v1999_v50 = vpop.f32.mrf.mxu0 }
 0x10b   : > { %v697_v38 = vadd.f32 %v2015_v24, %v1999_v50 }
 0x10c   : > { %v940_v51 = vpop.f32.mrf.mxu1  ;;  %v567_v52 = vpop.f32.mrf.mxu0 }
 0x10d   : > { %v689_v30 = vadd.f32 %v688_v45, %v567_v52 }
 0x10e   : > { %v2715_v53 = vpop.f32.mrf.mxu1  ;;  %v2026_v37 = vpop.f32.mrf.mxu0 }
 0x10f   : > { %v858_v36 = vadd.f32 %v2026_v37, %v678_v28 }
 0x110   : > { %v2717_v54 = vpop.f32.mrf.mxu1  ;;  %v825_v55 = vpop.f32.mrf.mxu0 }
 0x111   : > { %v856_v2 = vadd.f32 %v825_v55, %v670_v14  ;;  %v973_v35 = vadd.f32 %v2042_v49, %v858_v36 }
 0x112   : > { %v2046_v56 = vpop.f32.mrf.mxu1  ;;  %v2027_v57 = vpop.f32.mrf.mxu0 }
 0x114   : > { %v956_v58 = vpop.f32.mrf.mxu1  ;;  %v828_v59 = vpop.f32.mrf.mxu0 }
 0x116   : > { %v2047_v62 = vpop.f32.mrf.mxu1  ;;  %v2030_v63 = vpop.f32.mrf.mxu0 }
 0x117   : > { %v862_v7 = vadd.f32 %v2030_v63, %v694_v31  ;;  %v971_v63 = vadd.f32 %v940_v51, %v856_v2  ;;  %v857_v31 = vadd.f32 %v828_v59, %v673_v8  ;;  %v1554_v8 = vld [vmem:[%s2375_s11 + $0x10] sm:$0xff] }
 0x118   : > { %v959_v61 = vpop.f32.mrf.mxu1  ;;  %v841_v0 = vpop.f32.mrf.mxu0 }
 0x119   : > { %v860_v39 = vadd.f32 %v841_v0, %v686_v26  ;;  %v977_v12 = vadd.f32 %v2046_v56, %v862_v7 }
 0x11a   : > { %v2074_v1 = vpop.f32.mrf.mxu1  ;;  %v2031_v17 = vpop.f32.mrf.mxu0 }
 0x11b   : > { %v863_v46 = vadd.f32 %v2031_v17, %v697_v38  ;;  %v975_v47 = vadd.f32 %v956_v58, %v860_v39  ;;  %v1556_v38 = vld [vmem:[%s2375_s11 + $0x20] sm:$0xff] }
 0x11c   : > { %v2719_v4 = vpop.f32.mrf.mxu1  ;;  %v844_v5 = vpop.f32.mrf.mxu0 }
 0x11d   : > { %v861_v43 = vadd.f32 %v844_v5, %v689_v30  ;;  %v978_v41 = vadd.f32 %v2047_v62, %v863_v46 }
 0x11e   : > { %v2721_v6 = vpop.f32.mrf.mxu1 }
 0x11f   : > { %v2058_v10 = vpop.f32.mrf.mxu0  ;;  %v976_v44 = vadd.f32 %v959_v61, %v861_v43 }
 0x120   : > { %v2723_v11 = vpop.f32.mrf.mxu1  ;;  %v1101_v24 = vadd.f32 %v2058_v10, %v973_v35 }
 0x121   : > { %v1068_v18 = vpop.f32.mrf.mxu0 }
 0x122   : > { %v2078_v19 = vpop.f32.mrf.mxu1  ;;  %v1099_v45 = vadd.f32 %v1068_v18, %v971_v63  ;;  %v1220_v58 = vadd.f32 %v2074_v1, %v1101_v24  ;;  %v1552_v63 = vld [vmem:[%s2375_s11] sm:$0xff] }
 0x123   : > { %v2059_v25 = vpop.f32.mrf.mxu0 }
 0x124   : > { %v1203_v23 = vpop.f32.mrf.mxu1  ;;  %v1218_v62 = vadd.f32 %v2719_v4, %v1099_v45 }
 0x125   : > { %v1071_v27 = vpop.f32.mrf.mxu0 }
 0x126   : > { %v2079_v29 = vpop.f32.mrf.mxu1 }
 0x127   : > { %v2062_v9 = vpop.f32.mrf.mxu0 }
 0x128   : > { %v2725_v34 = vpop.f32.mrf.mxu1  ;;  %v1105_v37 = vadd.f32 %v2062_v9, %v977_v12 }
 0x129   : > { %v1084_v60 = vpop.f32.mrf.mxu0 }
 0x12a   : > { %v2727_v13 = vpop.f32.mrf.mxu1  ;;  %v1103_v55 = vadd.f32 %v1084_v60, %v975_v47  ;;  %v1224_v3 = vadd.f32 %v2078_v19, %v1105_v37 }
 0x12b   : > { %v2063_v33 = vpop.f32.mrf.mxu0 }
 0x12c   : > { %v2729_v21 = vpop.f32.mrf.mxu1  ;;  %v1106_v49 = vadd.f32 %v2063_v33, %v978_v41  ;;  %v1222_v59 = vadd.f32 %v1203_v23, %v1103_v55  ;;  %v1558_v33 = vld [vmem:[%s2375_s11 + $0x30] sm:$0xff] }
 0x12d   : > { %2802 = vst [vmem:[#allocation4_spill] sm:$0xff] %v2729_v21  ;;  %v1087_v16 = vpop.f32.mrf.mxu0  ;;  %v859_v21 = vadd.f32 %v2027_v57, %v681_v40  ;;  %v972_v57 = vadd.f32 %v2717_v54, %v857_v31  ;;  %v1557_v31 = vld [vmem:[%s2375_s11 + $0x28] sm:$0xff] }
 0x12e   : > { %v2731_v15 = vpop.f32.mrf.mxu1  ;;  %v1104_v10 = vadd.f32 %v1087_v16, %v976_v44 }
 0x12f   : > { %v2090_v32 = vpop.f32.mrf.mxu0  ;;  %v974_v0 = vadd.f32 %v2715_v53, %v859_v21  ;;  %v1100_v60 = vadd.f32 %v1071_v27, %v972_v57  ;;  %v1225_v21 = vadd.f32 %v2079_v29, %v1106_v49 }
 0x130   : > { %v2733_v22 = vpop.f32.mrf.mxu1  ;;  %v1323_v53 = vadd.f32 %v2090_v32, %v1220_v58  ;;  %v1223_v23 = vadd.f32 %v2725_v34, %v1104_v10 }
 0x131   : > { %v1290_v20 = vpop.f32.mrf.mxu0  ;;  %v1102_v17 = vadd.f32 %v2059_v25, %v974_v0  ;;  %v1219_v27 = vadd.f32 %v2723_v11, %v1100_v60  ;;  %v1559_v11 = vld [vmem:[%s2375_s11 + $0x38] sm:$0xff] }
 0x132   : > { %v2110_v48 = vpop.f32.mrf.mxu1  ;;  %v1321_v1 = vadd.f32 %v1290_v20, %v1218_v62  ;;  %v1439_v29 = vadd.f32 %v2727_v13, %v1323_v53  ;;  %v1555_v0 = vld [vmem:[%s2375_s11 + $0x18] sm:$0xff] }
 0x133   : > { %v2091_v50 = vpop.f32.mrf.mxu0  ;;  %v1221_v54 = vadd.f32 %v2721_v6, %v1102_v17 }
 0x134   : > { %v1422_v42 = vpop.f32.mrf.mxu1  ;;  %v2803_v32 = vld [vmem:[#allocation4_spill] sm:$0xff] }
 0x135   : > { %v1293_v52 = vpop.f32.mrf.mxu0  ;;  %v1324_v36 = vadd.f32 %v2091_v50, %v1221_v54  ;;  %v1437_v30 = vadd.f32 %v2803_v32, %v1321_v1 }
 0x136   : > { %v2111_v56 = vpop.f32.mrf.mxu1  ;;  %v1322_v12 = vadd.f32 %v1293_v52, %v1219_v27 }
 0x137   : > { %v2094_v5 = vpop.f32.mrf.mxu0  ;;  %v1440_v43 = vadd.f32 %v2731_v15, %v1324_v36 }
 0x138   : > { %v1425_v51 = vpop.f32.mrf.mxu1  ;;  %v1327_v9 = vadd.f32 %v2094_v5, %v1224_v3  ;;  %v1438_v45 = vadd.f32 %v2733_v22, %v1322_v12  ;;  %v1553_v3 = vld [vmem:[%s2375_s11 + $0x8] sm:$0xff] }
 0x139   : > { %v1306_v18 = vpop.f32.mrf.mxu0 }
 0x13a   : > { %v2126_v28 = vpop.f32.mrf.mxu1  ;;  %v1443_v61 = vadd.f32 %v2110_v48, %v1327_v9  ;;  %v1325_v19 = vadd.f32 %v1306_v18, %v1222_v59 }
 0x13b   : > { %v2095_v25 = vpop.f32.mrf.mxu0 }
 0x13c   : > { %v1529_v26 = vpop.f32.mrf.mxu1  ;;  %v1441_v7 = vadd.f32 %v1422_v42, %v1325_v19  ;;  %v1328_v14 = vadd.f32 %v2095_v25, %v1225_v21  ;;  %v1550_v4 = vadd.f32 %v2126_v28, %v1443_v61 }
 0x13d   : > { %v1309_v16 = vpop.f32.mrf.mxu0 }
 0x13e   : > { %v2127_v6 = vpop.f32.mrf.mxu1  ;;  %v1444_v39 = vadd.f32 %v2111_v56, %v1328_v14  ;;  %v1326_v40 = vadd.f32 %v1309_v16, %v1223_v23  ;;  %v1566_v2 = vadd.f32 %v1558_v33, %v1550_v4  ;;  %v1548_v34 = vadd.f32 %v1529_v26, %v1441_v7 }
 0x13f   : > { %v2122_v46 = vpop.f32.mrf.mxu0 }
 0x140   : > { %v1532_v35 = vpop.f32.mrf.mxu1  ;;  %v1442_v13 = vadd.f32 %v1425_v51, %v1326_v40  ;;  %v1546_v20 = vadd.f32 %v2122_v46, %v1439_v29  ;;  %1574 = vst [vmem:[%s2375_s11 + $0x30] sm:$0xff] %v1566_v2  ;;  %v1564_v48 = vadd.f32 %v1556_v38, %v1548_v34  ;;  %v1551_v47 = vadd.f32 %v2127_v6, %v1444_v39 }
 0x141   : > { %v1513_v37 = vpop.f32.mrf.mxu0 }
 0x142   : > { %v1562_v24 = vadd.f32 %v1554_v8, %v1546_v20  ;;  %v1544_v50 = vadd.f32 %v1513_v37, %v1437_v30  ;;  %1572 = vst [vmem:[%s2375_s11 + $0x20] sm:$0xff] %v1564_v48  ;;  %v1567_v42 = vadd.f32 %v1559_v11, %v1551_v47  ;;  %v1549_v41 = vadd.f32 %v1532_v35, %v1442_v13 }
 0x143   : > { %v2123_v55 = vpop.f32.mrf.mxu0 }
 0x144   : > { %1570 = vst [vmem:[%s2375_s11 + $0x10] sm:$0xff] %v1562_v24  ;;  %v1560_v52 = vadd.f32 %v1552_v63, %v1544_v50  ;;  %v1547_v15 = vadd.f32 %v2123_v55, %v1440_v43  ;;  %1575 = vst [vmem:[%s2375_s11 + $0x38] sm:$0xff] %v1567_v42  ;;  %v1565_v56 = vadd.f32 %v1557_v31, %v1549_v41 }
 0x145   : > { %v1516_v44 = vpop.f32.mrf.mxu0 }
 0x146   : > { %1568 = vst [vmem:[%s2375_s11] sm:$0xff] %v1560_v52  ;;  %v1563_v49 = vadd.f32 %v1555_v0, %v1547_v15  ;;  %v1545_v57 = vadd.f32 %v1516_v44, %v1438_v45  ;;  %1573 = vst [vmem:[%s2375_s11 + $0x28] sm:$0xff] %v1565_v56  ;;  %1579 = sbr.rel (%p1908_p10) target bundleno = 399 (0x18f), region = 36 }
 0x148   : > { %1571 = vst [vmem:[%s2375_s11 + $0x18] sm:$0xff] %v1563_v49  ;;  %v1561_v58 = vadd.f32 %v1553_v3, %v1545_v57 }
 0x14a   : > { %1569 = vst [vmem:[%s2375_s11 + $0x8] sm:$0xff] %v1561_v58 }
 0x14b   : > { %v1582_v5 = vld [vmem:[%s2375_s11 + $0x10] sm:$0xff]  ;;  %v1584_v9 = vld [vmem:[%s2375_s11 + $0x20] sm:$0xff]  ;;  %v1587_v21 = vld [vmem:[%s2375_s11 + $0x38] sm:$0xff]  ;;  %vm1631_vm7 = vcmask 1040384   ;;  %vm1633_vm8 = vcmask 1041408  }
 0x14c   : > { %v1586_v18 = vld [vmem:[%s2375_s11 + $0x30] sm:$0xff] }
 0x14d   : > { %v1580_v22 = vld [vmem:[%s2375_s11] sm:$0xff]  ;;  %v1585_v60 = vld [vmem:[%s2375_s11 + $0x28] sm:$0xff] }
 0x14f   : > { %v1583_v59 = vld [vmem:[%s2375_s11 + $0x18] sm:$0xff] }
 0x151   : > { %v1581_v17 = vld [vmem:[%s2375_s11 + $0x8] sm:$0xff] }
 0x152   : > { %v1588_v51 = vadd.f32 %v1581_v17, %v1580_v22 }
 0x154   : > { %v1589_v10 = vadd.f32 %v1588_v51, %v1582_v5 }
 0x156   : > { %v1590_v62 = vadd.f32 %v1589_v10, %v1583_v59 }
 0x158   : > { %v1591_v53 = vadd.f32 %v1590_v62, %v1584_v9 }
 0x15a   : > { %v1592_v28 = vadd.f32 %v1591_v53, %v1585_v60 }
 0x15c   : > { %v1593_v61 = vadd.f32 %v1592_v28, %v1586_v18 }
 0x15e   : > { %v1594_v19 = vadd.f32 %v1593_v61, %v1587_v21 }
 0x160   : > { %v1595_v54 = vrot.slane %v1594_v19, 4 }
 0x162   : > { %v1596_v1 = vadd.f32 %v1595_v54, %v1594_v19 }
 0x164   : > { %v1597_v25 = vrot.slane %v1596_v1, 2 }
 0x166   : > { %v1598_v33 = vadd.f32 %v1597_v25, %v1596_v1 }
 0x168   : > { %v1599_v26 = vrot.slane %v1598_v33, 1 }
 0x16a   : > { %v1600_v23 = vadd.f32 %v1599_v26, %v1598_v33 }
 0x16c   : > { %v1601_v7 = vmul.f32 0.015625, %v1600_v23 }
 0x16e   : > { %v1602_v14 = vsub.f32 %v1580_v22, %v1601_v7  ;;  %v1603_v4 = vsub.f32 %v1581_v17, %v1601_v7  ;;  %v1604_v27 = vsub.f32 %v1582_v5, %v1601_v7  ;;  %v1605_v29 = vsub.f32 %v1583_v59, %v1601_v7 }
 0x16f   : > { %v1606_v36 = vsub.f32 %v1584_v9, %v1601_v7  ;;  %v1607_v39 = vsub.f32 %v1585_v60, %v1601_v7  ;;  %v1608_v34 = vsub.f32 %v1586_v18, %v1601_v7  ;;  %v1609_v12 = vsub.f32 %v1587_v21, %v1601_v7 }
 0x170   : > { %v1610_v16 = vmul.f32 %v1602_v14, %v1602_v14  ;;  %v1611_v38 = vmul.f32 %v1603_v4, %v1603_v4  ;;  %v1612_v6 = vmul.f32 %v1604_v27, %v1604_v27  ;;  %v1613_v40 = vmul.f32 %v1605_v29, %v1605_v29 }
 0x171   : > { %v1614_v32 = vmul.f32 %v1606_v36, %v1606_v36  ;;  %v1615_v46 = vmul.f32 %v1607_v39, %v1607_v39  ;;  %v1616_v11 = vmul.f32 %v1608_v34, %v1608_v34  ;;  %v1617_v13 = vmul.f32 %v1609_v12, %v1609_v12 }
 0x172   : > { %v1618_v2 = vadd.f32 %v1611_v38, %v1610_v16 }
 0x174   : > { %v1619_v30 = vadd.f32 %v1618_v2, %v1612_v6 }
 0x176   : > { %v1620_v8 = vadd.f32 %v1619_v30, %v1613_v40 }
 0x178   : > { %v1621_v35 = vadd.f32 %v1620_v8, %v1614_v32 }
 0x17a   : > { %v1622_v20 = vadd.f32 %v1621_v35, %v1615_v46 }
 0x17c   : > { %v1623_v48 = vadd.f32 %v1622_v20, %v1616_v11 }
 0x17e   : > { %v1624_v47 = vadd.f32 %v1623_v48, %v1617_v13 }
 0x180   : > { %v1625_v43 = vrot.slane %v1624_v47, 4 }
 0x182   : > { %v1626_v37 = vadd.f32 %v1625_v43, %v1624_v47 }
 0x184   : > { %v1627_v63 = vrot.slane %v1626_v37, 2 }
 0x186   : > { %v1628_v31 = vadd.f32 %v1627_v63, %v1626_v37 }
 0x188   : > { %v1629_v24 = vrot.slane %v1628_v31, 1 }
 0x18a   : > { %v1630_v50 = vadd.f32 %v1629_v24, %v1628_v31 }
 0x18c   : > { %v1632_v42 = vsel %vm1631_vm7, %v1600_v23, %v1630_v50 }
 0x18d   : > { %v1634_v41 = vsel %vm1633_vm8, %v1632_v42, 0.0 }
 0x18e   : > { %1635 = vst [vmem:[%s2380_s14] sm:$0xff] %v1634_v41 }
 0x18f PF: > { %s14_s18 = sadd.s32 1, %s2294_s18   ;;  %s2804_s24 = sld [smem:[#allocation2_spill]] }
 0x190   : > { %p11_p11 = scmp.ge.s32.totalorder %s14_s18, 26   ;;  %s2805_s25 = sld [smem:[#allocation3_spill]] }
 0x191   : > { %s2806_s12 = smov %s2282_s15  ;;  %s2807_s13 = smov %s2286_s16 }
 0x192   : > { %s2808_s14 = smov %s2290_s17  ;;  %s2809_s15 = smov %s2813_s19 }
 0x193   :  { %13 = sbr.rel (!%p11_p11) target bundleno = 4 (0x4), region = 79 }
 0x195   : > { %s2810_s16 = smov %s2804_s24 }
 0x196   : > { %s2811_s17 = smov %s2805_s25 }

// kernel: conv_module_forward.3
= control target key start
LH: loop header
LB: loop body
LE: loop exit
PB: predicated region body
PF: predicated region fallthrough
CT: control target
= control target key end

     0   :  { %s471_s12 = smov 0   ;;  %s473_s13 = smov 0   ;;  %s528_s0 = inlined_call_operand.vmem [shape: f32[2,4,64,128], index: 0, kind: input, shape index: {}, may-alias: {0,3}]   ;;  %s529_s1 = inlined_call_operand.vmem [shape: f32[1,128], index: 1, kind: input, shape index: {}]   ;;  %s530_s2 = inlined_call_operand.vmem [shape: f32[1,128], index: 2, kind: input, shape index: {}]   ;;  %s531_s3 = inlined_call_operand.vmem [shape: f32[2,4,64,128], index: 3, kind: output, shape index: {}, may-alias: {0,3}]  }
   0x1   :  { %s475_s14 = smov 0   ;;  %s477_s15 = smov 0  }
   0x2   :  { %s479_s16 = smov 0  }
   0x3 LB: > { %s22_s17 = sadd.s32 1, %s441_s14  ;;  %s25_s18 = sadd.s32 1, %s445_s15  ;;  %s449_s16 = sphi %s479_s16, %s13_s16   ;;  %s445_s15 = sphi %s477_s15, %s535_s15   ;;  %s441_s14 = sphi %s475_s14, %s534_s14   ;;  %s437_s13 = sphi %s473_s13, %s533_s13   ;;  %s433_s12 = sphi %s471_s12, %s532_s12  }
   0x4   : > { %p23_p0 = scmp.ge.s32.totalorder %s22_s17, 4  ;;  %p360_p1 = scmp.ge.s32.totalorder %s449_s16, 1 }
   0x5   : > { %p157_p2 = scmp.lt.s32.totalorder %s449_s16, 9 }
   0x6   : > { %s537_s17 = smov (%p23_p0, %s22_s17), 0  ;;  %s539_s18 = smov (!%p23_p0, %s25_s18), %s445_s15 }
   0x7   : > { %p158_p3 = pnand %p360_p1, %p157_p2  ;;  %p27_p4 = scmp.ge.s32.totalorder %s539_s18, 2 }
   0x8   : > { %p189_p5 = scmp.lt.s32.totalorder (!%p158_p3), %s437_s13, 1  ;;  %p191_p6 = scmp.lt.s32.totalorder (!%p158_p3), %s433_s12, 3 }
   0x9   : > { %s541_s18 = smov (%p27_p4, %s539_s18), 0  ;;  %161 = sbr.rel (%p158_p3) target bundleno = 30 (0x1e), region = 32 }
   0xe   : > { %s543_s13 = smov (!%p189_p5, %s437_s13), 1  ;;  %s545_s12 = smov (!%p191_p6, %s433_s12), 3  ;;  %v367_v0 = vld [vmem:[%s529_s1] ss:$0 sm:$0xff] }
   0xf   : > { %s362_s19 = sshll.u32 %s543_s13, 5  ;;  %s361_s20 = sshll.u32 %s545_s12, 3  ;;  %v368_v1 = vld [vmem:[%s530_s2] ss:$0 sm:$0xff] }
  0x10   : > { %s195_s21 = sadd.s32 %s362_s19, %s361_s20 }
  0x11   : > { %s363_s22 = sshll.u32 %s195_s21, 3 }
  0x12   : > { %s197_s27 = scalar_lea.vmem %s528_s0, %s363_s22  ;;  %s206_s5 = scalar_lea.vmem %s531_s3, %s363_s22 }
  0x13   : > { %v207_v2 = vld [vmem:[%s197_s27] sm:$0xff]  ;;  %v208_v3 = vld [vmem:[%s197_s27 + $0x8] sm:$0xff]  ;;  %v209_v4 = vld [vmem:[%s197_s27 + $0x10] sm:$0xff] }
  0x14   : > { %v210_v5 = vld [vmem:[%s197_s27 + $0x18] sm:$0xff]  ;;  %v211_v6 = vld [vmem:[%s197_s27 + $0x20] sm:$0xff]  ;;  %v212_v7 = vld [vmem:[%s197_s27 + $0x28] sm:$0xff]  ;;  %v222_v8 = vmul.f32 %v367_v0, %v207_v2  ;;  %v223_v9 = vmul.f32 %v367_v0, %v208_v3  ;;  %v224_v10 = vmul.f32 %v367_v0, %v209_v4 }
  0x15   : > { %v213_v11 = vld [vmem:[%s197_s27 + $0x30] sm:$0xff]  ;;  %v214_v12 = vld [vmem:[%s197_s27 + $0x38] sm:$0xff]  ;;  %v225_v13 = vmul.f32 %v367_v0, %v210_v5  ;;  %v226_v14 = vmul.f32 %v367_v0, %v211_v6  ;;  %v227_v15 = vmul.f32 %v367_v0, %v212_v7 }
  0x16   : > { %v228_v16 = vmul.f32 %v367_v0, %v213_v11  ;;  %v229_v17 = vmul.f32 %v367_v0, %v214_v12  ;;  %v237_v18 = vadd.f32 %v368_v1, %v222_v8  ;;  %v238_v19 = vadd.f32 %v368_v1, %v223_v9 }
  0x17   : > { %v239_v20 = vadd.f32 %v368_v1, %v224_v10  ;;  %v240_v21 = vadd.f32 %v368_v1, %v225_v13  ;;  %v241_v22 = vadd.f32 %v368_v1, %v226_v14  ;;  %v242_v23 = vadd.f32 %v368_v1, %v227_v15 }
  0x18   : > { %v243_v24 = vadd.f32 %v368_v1, %v228_v16  ;;  %v244_v25 = vadd.f32 %v368_v1, %v229_v17  ;;  %v245_v26 = vmax.f32 %v237_v18, 0.0  ;;  %v246_v27 = vmax.f32 %v238_v19, 0.0 }
  0x19   : > { %v247_v28 = vmax.f32 %v239_v20, 0.0  ;;  %v248_v29 = vmax.f32 %v240_v21, 0.0  ;;  %v249_v30 = vmax.f32 %v241_v22, 0.0  ;;  %v250_v31 = vmax.f32 %v242_v23, 0.0 }
  0x1a   : > { %v251_v32 = vmax.f32 %v243_v24, 0.0  ;;  %v252_v33 = vmax.f32 %v244_v25, 0.0  ;;  %253 = vst [vmem:[%s206_s5] sm:$0xff] %v245_v26  ;;  %254 = vst [vmem:[%s206_s5 + $0x8] sm:$0xff] %v246_v27 }
  0x1b   : > { %255 = vst [vmem:[%s206_s5 + $0x10] sm:$0xff] %v247_v28  ;;  %256 = vst [vmem:[%s206_s5 + $0x18] sm:$0xff] %v248_v29 }
  0x1c   : > { %257 = vst [vmem:[%s206_s5 + $0x20] sm:$0xff] %v249_v30  ;;  %258 = vst [vmem:[%s206_s5 + $0x28] sm:$0xff] %v250_v31 }
  0x1d   : > { %259 = vst [vmem:[%s206_s5 + $0x30] sm:$0xff] %v251_v32  ;;  %260 = vst [vmem:[%s206_s5 + $0x38] sm:$0xff] %v252_v33 }
  0x1e PF: > { %s13_s16 = sadd.s32 1, %s449_s16   ;;  %s532_s12 = smov %s441_s14 }
  0x1f   : > { %p10_p7 = scmp.ge.s32.totalorder %s13_s16, 10   ;;  %s533_s13 = smov %s445_s15 }
  0x20   : > { %s534_s14 = smov %s537_s17  ;;  %s535_s15 = smov %s541_s18 }
  0x21   :  { %12 = sbr.rel (!%p10_p7) target bundleno = 3 (0x3), region = 62 }

</bundles_post_ra>
